<compile_context>
chip_gen: v5e
topology: v5e:2x2
jax: 0.10.0
libtpu: 0.0.40
codegen_flags: <defaults>
</compile_context>

<pallas_src>
import functools

import jax
import jax.numpy as jnp
from jax.experimental import pallas as pl
from jax.experimental.pallas import tpu as pltpu

CFG = dict(
    vocab_size=128,
    context_length=16,
    emb_dim=32,
    n_heads=4,
    n_layers=2,
    drop_rate=0.0,     # dropout is an exact identity at p=0.0
    qkv_bias=False,
)
EPS = 1e-5


# ----------------------------- in-kernel helpers -----------------------------
def _gelu(x):
    return 0.5 * x * (1.0 + jnp.tanh(0.7978845608 * (x + 0.044715 * x ** 3)))


def _layernorm(x, scale, bias):
    # Matches the reference LayerNorm exactly: unbiased std (N-1), divide by
    # (std + eps), NOT sqrt(var + eps).  Reciprocal goes to the EUP.
    mean = jnp.mean(x, axis=-1, keepdims=True)
    d = x - mean
    var = jnp.sum(d * d, axis=-1, keepdims=True) * (1.0 / (x.shape[-1] - 1))
    inv = pl.reciprocal(jnp.sqrt(var) + EPS, approx=True)
    return scale * (d * inv) + bias


def _bf16(x):
    return x.astype(jnp.bfloat16)


def _mm(a, b):
    # bf16 MXU operands (weights already stored bf16), f32 accumulation.
    return jnp.dot(_bf16(a), _bf16(b), preferred_element_type=jnp.float32)


def _bmm(eq, a, b):
    return jnp.einsum(eq, _bf16(a), _bf16(b), preferred_element_type=jnp.float32)


# ------------------------------- fused kernel --------------------------------
def gpt_kernel(tok_ref, pos_ref, mask_ref, vec_ref, wqkv_ref, wo_ref, w1_ref,
               b1_ref, w2_ref, lnf_ref, wout_ref, o_ref, *, num_heads,
               n_layers):
    # Whole batch in one step: x is (N, E) with N = B*T.
    x = tok_ref[...].astype(jnp.float32) + pos_ref[...].astype(jnp.float32)
    N, E = x.shape
    hd = E // num_heads
    inv_scale = jnp.float32(1.0 / (hd ** 0.5))

    # (1, N, N) additive mask: 0 where attention is allowed (same batch row and
    # query <= key), -inf otherwise (causal + block-diagonal across the batch).
    neg_mask = mask_ref[...]

    for l in range(n_layers):                          # static unroll (L small)
        vp = vec_ref[l]                                # (6, E) packed LN/bias rows
        ln1_s, ln1_b = vp[0:1], vp[1:2]
        ln2_s, ln2_b = vp[2:3], vp[3:4]
        bo, b2 = vp[4:5], vp[5:6]

        # ---- multi-head attention (pre-LN) ----
        xn = _layernorm(x, ln1_s, ln1_b)
        qkv = _mm(xn, wqkv_ref[l])                     # (N, 3E) single fused matmul

        def heads(base, qkv=qkv, hd=hd):               # -> (H, N, hd)
            return jnp.stack(
                [qkv[:, base + h * hd: base + (h + 1) * hd]
                 for h in range(num_heads)], axis=0)

        q3 = heads(0)
        k3 = heads(E)
        v3 = heads(2 * E)

        # keys @ queries^T per head (matches the PyTorch source), mask
        # (cross-batch OR query>key), scale, softmax over the query axis.
        s = _bmm("hkd,hqd->hkq", k3, q3)               # (H, N_key, N_query)
        s = (s + neg_mask) * inv_scale
        s = s - jnp.max(s, axis=-1, keepdims=True)
        p = jnp.exp(s)                                 # masked entries -> exactly 0
        p = p * pl.reciprocal(jnp.sum(p, axis=-1, keepdims=True), approx=True)
        ctx = _bmm("hkq,hqd->hkd", p, v3)              # (H, N, hd)

        # Output projection folds the head concat: wo stored as (H, hd, E).
        proj = _bmm("hkd,hde->hke", ctx, wo_ref[l])    # (H, N, E)
        attn = proj[0]
        for h in range(1, num_heads):
            attn = attn + proj[h]
        x = x + attn + bo                              # residual (dropout p=0)

        # ---- MLP (pre-LN) ----
        xn2 = _layernorm(x, ln2_s, ln2_b)
        h1 = _gelu(_mm(xn2, w1_ref[l]) + b1_ref[l])
        x = x + _mm(h1, w2_ref[l]) + b2                # residual

    # ---- final norm + LM head ----
    lnf = lnf_ref[...]
    xn = _layernorm(x, lnf[0:1], lnf[1:2])
    o_ref[...] = _mm(xn, wout_ref[...])                # (N, V), V=128 lane-dense


# --------------------------------- wrapper -----------------------------------
def _full_spec(arr):
    n = arr.ndim
    return pl.BlockSpec(arr.shape, lambda i, n=n: (0,) * n)


def gpt_forward(params, in_idx, cfg):
    B, T = in_idx.shape
    E, V = cfg["emb_dim"], cfg["vocab_size"]
    N = B * T

    # TODO(synk): the token-embedding gather stays in XLA; a Pallas gather has
    # no win at vocab=128 / E=32.
    tok = params["tok_emb"][in_idx].reshape(N, E)                     # bf16 (N,E)
    pos = jnp.broadcast_to(params["pos_emb"][:T][None, :, :],
                           (B, T, E)).reshape(N, E)                   # bf16 (N,E)

    # Block-diagonal causal additive mask over the flattened token axis.
    kidx = jnp.arange(N)[:, None]     # key index   (score rows)
    qidx = jnp.arange(N)[None, :]     # query index (score cols, softmax axis)
    allowed = (kidx // T == qidx // T) & (qidx <= kidx)
    mask = jnp.where(allowed, 0.0, -jnp.inf).astype(jnp.float32)[None]  # (1,N,N)

    kern = functools.partial(gpt_kernel, num_heads=cfg["n_heads"],
                             n_layers=cfg["n_layers"])
    args = [tok, pos, mask, params["vecs"], params["wqkv"], params["wo"],
            params["w1"], params["b1"], params["w2"], params["lnf"],
            params["w_out"]]
    in_specs = [_full_spec(a) for a in args]

    out = pl.pallas_call(
        kern,
        out_shape=jax.ShapeDtypeStruct((N, V), jnp.float32),
        grid=(1,),                 # whole batch in one step (amortizes overhead)
        in_specs=in_specs,
        out_specs=pl.BlockSpec((N, V), lambda i: (0, 0)),
        compiler_params=pltpu.CompilerParams(
            dimension_semantics=("arbitrary",)),
    )(*args)
    return out.reshape(B, T, V)


# --------------------------- parameter construction --------------------------
def init_params(key, cfg):
    E, V, C = cfg["emb_dim"], cfg["vocab_size"], cfg["context_length"]
    H, L = cfg["n_heads"], cfg["n_layers"]
    hd = E // H

    def nrm(k, shape, s=0.02):
        return jax.random.normal(k, shape, jnp.float32) * s

    k_tok, k_pos, k_out, k_layers = jax.random.split(key, 4)
    layer_keys = jax.random.split(k_layers, L)

    vecs, wqkv, wo, w1, b1, w2 = [], [], [], [], [], []
    for lk in layer_keys:
        ks = jax.random.split(lk, 9)
        # packed per-layer vectors: [ln1_s, ln1_b, ln2_s, ln2_b, bo, b2]
        vecs.append(jnp.stack([
            jnp.ones(E, jnp.float32), jnp.zeros(E, jnp.float32),
            jnp.ones(E, jnp.float32), jnp.zeros(E, jnp.float32),
            nrm(ks[0], (E,)), nrm(ks[1], (E,))]))
        wqkv.append(jnp.concatenate(
            [nrm(ks[2], (E, E)), nrm(ks[3], (E, E)), nrm(ks[4], (E, E))], axis=1))
        wo.append(nrm(ks[5], (E, E)).reshape(H, hd, E))
        w1.append(nrm(ks[6], (E, 4 * E)))
        b1.append(nrm(ks[7], (1, 4 * E)))
        w2.append(nrm(ks[8], (4 * E, E)))

    bf = jnp.bfloat16
    return dict(
        tok_emb=nrm(k_tok, (V, E)).astype(bf),
        pos_emb=nrm(k_pos, (C, E)).astype(bf),
        vecs=jnp.stack(vecs),                  # (L, 6, E)  f32 (elementwise params)
        wqkv=jnp.stack(wqkv).astype(bf),       # (L, E, 3E) bf16
        wo=jnp.stack(wo).astype(bf),           # (L, H, hd, E) bf16
        w1=jnp.stack(w1).astype(bf),           # (L, E, 4E) bf16
        b1=jnp.stack(b1),                      # (L, 1, 4E) f32
        w2=jnp.stack(w2).astype(bf),           # (L, 4E, E) bf16
        lnf=jnp.stack([jnp.ones(E, jnp.float32), jnp.zeros(E, jnp.float32)]),
        w_out=nrm(k_out, (E, V)).astype(bf),   # (E, V) bf16
    )


# ------------------------------ pure-JAX reference ---------------------------
def reference_forward(params, in_idx, cfg):
    B, T = in_idx.shape
    E, H, L = cfg["emb_dim"], cfg["n_heads"], cfg["n_layers"]
    hd = E // H
    f32 = lambda a: a.astype(jnp.float32)

    def ln(x, s, b):
        mean = x.mean(-1, keepdims=True)
        d = x - mean
        std = jnp.sqrt(jnp.sum(d * d, axis=-1, keepdims=True) / (E - 1))
        return s * d / (std + EPS) + b

    x = f32(params["tok_emb"][in_idx]) + f32(params["pos_emb"][:T])
    mask = jnp.triu(jnp.ones((T, T), bool), k=1)
    for l in range(L):
        vp = params["vecs"][l]
        ln1_s, ln1_b, ln2_s, ln2_b, bo, b2 = (vp[i] for i in range(6))
        xn = ln(x, ln1_s, ln1_b)
        qkv = xn @ f32(params["wqkv"][l])
        q, k, v = qkv[..., :E], qkv[..., E:2 * E], qkv[..., 2 * E:]
        qh = q.reshape(B, T, H, hd).transpose(0, 2, 1, 3)
        kh = k.reshape(B, T, H, hd).transpose(0, 2, 1, 3)
        vh = v.reshape(B, T, H, hd).transpose(0, 2, 1, 3)
        s = kh @ jnp.swapaxes(qh, -1, -2)              # keys @ queries^T
        s = jnp.where(mask, -jnp.inf, s) / (hd ** 0.5)
        p = jax.nn.softmax(s, axis=-1)
        ctx = (p @ vh).transpose(0, 2, 1, 3).reshape(B, T, E)
        wo = f32(params["wo"][l]).reshape(E, E)
        x = x + (ctx @ wo + bo)
        xn2 = ln(x, ln2_s, ln2_b)
        h1 = _gelu(xn2 @ f32(params["w1"][l]) + params["b1"][l][0])
        x = x + (h1 @ f32(params["w2"][l]) + b2)
    xn = ln(x, params["lnf"][0], params["lnf"][1])
    return xn @ f32(params["w_out"])


# ----------------------------------- main ------------------------------------
if __name__ == "__main__":
    key = jax.random.PRNGKey(0)
    pkey, ikey = jax.random.split(key)
    params = init_params(pkey, CFG)

    B, T = 2, 8
    in_idx = jax.random.randint(ikey, (B, T), 0, CFG["vocab_size"],
                                dtype=jnp.int32)

    fwd = jax.jit(functools.partial(gpt_forward, cfg=CFG))
    logits = jax.block_until_ready(fwd(params, in_idx))

    assert logits.shape == (B, T, CFG["vocab_size"]), logits.shape
    assert bool(jnp.all(jnp.isfinite(logits)))

    ref = reference_forward(params, in_idx, CFG)
    max_err = float(jnp.max(jnp.abs(logits - ref)))
    # bf16 matmul operands + approx reciprocal -> loose-but-tight tolerance
    # relative to the f32 reference.
    assert bool(jnp.allclose(logits, ref, atol=2e-2, rtol=2e-2)), max_err

    print("KERNEL_OK")
</pallas_src>

<mosaic_0001>
module attributes {stable_mosaic.version = 11 : i64} {
  func.func @gpt_kernel(%arg0: i32, %arg1: memref<16x32xbf16, #tpu.memory_space<vmem>>, %arg2: memref<16x32xbf16, #tpu.memory_space<vmem>>, %arg3: memref<1x16x16xf32, #tpu.memory_space<vmem>>, %arg4: memref<2x6x32xf32, #tpu.memory_space<vmem>>, %arg5: memref<2x32x96xbf16, #tpu.memory_space<vmem>>, %arg6: memref<2x4x8x32xbf16, #tpu.memory_space<vmem>>, %arg7: memref<2x32x128xbf16, #tpu.memory_space<vmem>>, %arg8: memref<2x1x128xf32, #tpu.memory_space<vmem>>, %arg9: memref<2x128x32xbf16, #tpu.memory_space<vmem>>, %arg10: memref<2x32xf32, #tpu.memory_space<vmem>>, %arg11: memref<32x128xbf16, #tpu.memory_space<vmem>>, %arg12: memref<16x128xf32, #tpu.memory_space<vmem>>) attributes {dimension_semantics = [#tpu.dimension_semantics<arbitrary>], iteration_bounds = array<i64: 1>, scalar_prefetch = 0 : i64, scratch_operands = 0 : i64, tpu.core_type = #tpu.core_type<tc>, window_params = [{pipeline_mode = #tpu.pipeline_mode<synchronous>, transform_indices = @transform_0, window_bounds = array<i64: 16, 32>}, {pipeline_mode = #tpu.pipeline_mode<synchronous>, transform_indices = @transform_1, window_bounds = array<i64: 16, 32>}, {pipeline_mode = #tpu.pipeline_mode<synchronous>, transform_indices = @transform_2, window_bounds = array<i64: 1, 16, 16>}, {pipeline_mode = #tpu.pipeline_mode<synchronous>, transform_indices = @transform_3, window_bounds = array<i64: 2, 6, 32>}, {pipeline_mode = #tpu.pipeline_mode<synchronous>, transform_indices = @transform_4, window_bounds = array<i64: 2, 32, 96>}, {pipeline_mode = #tpu.pipeline_mode<synchronous>, transform_indices = @transform_5, window_bounds = array<i64: 2, 4, 8, 32>}, {pipeline_mode = #tpu.pipeline_mode<synchronous>, transform_indices = @transform_6, window_bounds = array<i64: 2, 32, 128>}, {pipeline_mode = #tpu.pipeline_mode<synchronous>, transform_indices = @transform_7, window_bounds = array<i64: 2, 1, 128>}, {pipeline_mode = #tpu.pipeline_mode<synchronous>, transform_indices = @transform_8, window_bounds = array<i64: 2, 128, 32>}, {pipeline_mode = #tpu.pipeline_mode<synchronous>, transform_indices = @transform_9, window_bounds = array<i64: 2, 32>}, {pipeline_mode = #tpu.pipeline_mode<synchronous>, transform_indices = @transform_10, window_bounds = array<i64: 32, 128>}, {pipeline_mode = #tpu.pipeline_mode<synchronous>, transform_indices = @transform_11, window_bounds = array<i64: 16, 128>}]} {
    %c0 = arith.constant 0 : index
    %c0_0 = arith.constant 0 : index
    %0 = vector.load %arg1[%c0, %c0_0] : memref<16x32xbf16, #tpu.memory_space<vmem>>, vector<16x32xbf16>
    %1 = arith.extf %0 : vector<16x32xbf16> to vector<16x32xf32>
    %c0_1 = arith.constant 0 : index
    %c0_2 = arith.constant 0 : index
    %2 = vector.load %arg2[%c0_1, %c0_2] : memref<16x32xbf16, #tpu.memory_space<vmem>>, vector<16x32xbf16>
    %3 = arith.extf %2 : vector<16x32xbf16> to vector<16x32xf32>
    %4 = arith.addf %1, %3 : vector<16x32xf32>
    %c0_3 = arith.constant 0 : index
    %c0_4 = arith.constant 0 : index
    %c0_5 = arith.constant 0 : index
    %5 = vector.load %arg3[%c0_3, %c0_4, %c0_5] : memref<1x16x16xf32, #tpu.memory_space<vmem>>, vector<1x16x16xf32>
    %c0_6 = arith.constant 0 : index
    %c0_7 = arith.constant 0 : index
    %c0_8 = arith.constant 0 : index
    %6 = vector.load %arg4[%c0_6, %c0_7, %c0_8] : memref<2x6x32xf32, #tpu.memory_space<vmem>>, vector<1x6x32xf32>
    %7 = vector.shape_cast %6 : vector<1x6x32xf32> to vector<6x32xf32>
    %8 = vector.extract_strided_slice %7 {offsets = [0, 0], sizes = [1, 32], strides = [1, 1]} : vector<6x32xf32> to vector<1x32xf32>
    %9 = vector.extract_strided_slice %7 {offsets = [1, 0], sizes = [1, 32], strides = [1, 1]} : vector<6x32xf32> to vector<1x32xf32>
    %10 = vector.extract_strided_slice %7 {offsets = [2, 0], sizes = [1, 32], strides = [1, 1]} : vector<6x32xf32> to vector<1x32xf32>
    %11 = vector.extract_strided_slice %7 {offsets = [3, 0], sizes = [1, 32], strides = [1, 1]} : vector<6x32xf32> to vector<1x32xf32>
    %12 = vector.extract_strided_slice %7 {offsets = [4, 0], sizes = [1, 32], strides = [1, 1]} : vector<6x32xf32> to vector<1x32xf32>
    %13 = vector.extract_strided_slice %7 {offsets = [5, 0], sizes = [1, 32], strides = [1, 1]} : vector<6x32xf32> to vector<1x32xf32>
    %cst = arith.constant dense<0.000000e+00> : vector<16xf32>
    %14 = vector.multi_reduction <add>, %4, %cst [1] : vector<16x32xf32> to vector<16xf32>
    %15 = vector.shape_cast %14 : vector<16xf32> to vector<16x1xf32>
    %cst_9 = arith.constant 3.200000e+01 : f32
    %16 = vector.broadcast %cst_9 : f32 to vector<16x1xf32>
    %17 = arith.divf %15, %16 : vector<16x1xf32>
    %18 = vector.broadcast %17 : vector<16x1xf32> to vector<16x32xf32>
    %19 = arith.subf %4, %18 : vector<16x32xf32>
    %20 = arith.mulf %19, %19 : vector<16x32xf32>
    %cst_10 = arith.constant dense<0.000000e+00> : vector<16xf32>
    %21 = vector.multi_reduction <add>, %20, %cst_10 [1] : vector<16x32xf32> to vector<16xf32>
    %22 = vector.shape_cast %21 : vector<16xf32> to vector<16x1xf32>
    %cst_11 = arith.constant 0.0322580636 : f32
    %23 = vector.broadcast %cst_11 : f32 to vector<16x1xf32>
    %24 = arith.mulf %22, %23 : vector<16x1xf32>
    %25 = math.sqrt %24 : vector<16x1xf32>
    %cst_12 = arith.constant 9.99999974E-6 : f32
    %26 = vector.broadcast %cst_12 : f32 to vector<16x1xf32>
    %27 = arith.addf %25, %26 : vector<16x1xf32>
    %28 = tpu.reciprocal %27 {approx = true} : vector<16x1xf32> -> vector<16x1xf32>
    %29 = vector.broadcast %28 : vector<16x1xf32> to vector<16x32xf32>
    %30 = arith.mulf %19, %29 : vector<16x32xf32>
    %31 = vector.broadcast %8 : vector<1x32xf32> to vector<16x32xf32>
    %32 = arith.mulf %31, %30 : vector<16x32xf32>
    %33 = vector.broadcast %9 : vector<1x32xf32> to vector<16x32xf32>
    %34 = arith.addf %32, %33 : vector<16x32xf32>
    %c0_13 = arith.constant 0 : index
    %c0_14 = arith.constant 0 : index
    %c0_15 = arith.constant 0 : index
    %35 = vector.load %arg5[%c0_13, %c0_14, %c0_15] : memref<2x32x96xbf16, #tpu.memory_space<vmem>>, vector<1x32x96xbf16>
    %36 = vector.shape_cast %35 : vector<1x32x96xbf16> to vector<32x96xbf16>
    %37 = arith.truncf %34 : vector<16x32xf32> to vector<16x32xbf16>
    %cst_16 = arith.constant dense<0.000000e+00> : vector<16x96xf32>
    %38 = tpu.matmul %37, %36, %cst_16 {dimension_numbers = #tpu.dot_dimension_numbers<[1], [0], [0], [1], [0, 0, 1, 1], [], []>} : vector<16x32xbf16>, vector<32x96xbf16>, vector<16x96xf32> -> vector<16x96xf32>
    %39 = vector.extract_strided_slice %38 {offsets = [0, 0], sizes = [16, 8], strides = [1, 1]} : vector<16x96xf32> to vector<16x8xf32>
    %40 = vector.extract_strided_slice %38 {offsets = [0, 8], sizes = [16, 8], strides = [1, 1]} : vector<16x96xf32> to vector<16x8xf32>
    %41 = vector.extract_strided_slice %38 {offsets = [0, 16], sizes = [16, 8], strides = [1, 1]} : vector<16x96xf32> to vector<16x8xf32>
    %42 = vector.extract_strided_slice %38 {offsets = [0, 24], sizes = [16, 8], strides = [1, 1]} : vector<16x96xf32> to vector<16x8xf32>
    %43 = vector.shape_cast %39 : vector<16x8xf32> to vector<1x16x8xf32>
    %44 = vector.shape_cast %40 : vector<16x8xf32> to vector<1x16x8xf32>
    %45 = vector.shape_cast %41 : vector<16x8xf32> to vector<1x16x8xf32>
    %46 = vector.shape_cast %42 : vector<16x8xf32> to vector<1x16x8xf32>
    %47 = tpu.concatenate %43, %44, %45, %46 in 0 : vector<1x16x8xf32>, vector<1x16x8xf32>, vector<1x16x8xf32>, vector<1x16x8xf32> -> vector<4x16x8xf32>
    %48 = vector.extract_strided_slice %38 {offsets = [0, 32], sizes = [16, 8], strides = [1, 1]} : vector<16x96xf32> to vector<16x8xf32>
    %49 = vector.extract_strided_slice %38 {offsets = [0, 40], sizes = [16, 8], strides = [1, 1]} : vector<16x96xf32> to vector<16x8xf32>
    %50 = vector.extract_strided_slice %38 {offsets = [0, 48], sizes = [16, 8], strides = [1, 1]} : vector<16x96xf32> to vector<16x8xf32>
    %51 = vector.extract_strided_slice %38 {offsets = [0, 56], sizes = [16, 8], strides = [1, 1]} : vector<16x96xf32> to vector<16x8xf32>
    %52 = vector.shape_cast %48 : vector<16x8xf32> to vector<1x16x8xf32>
    %53 = vector.shape_cast %49 : vector<16x8xf32> to vector<1x16x8xf32>
    %54 = vector.shape_cast %50 : vector<16x8xf32> to vector<1x16x8xf32>
    %55 = vector.shape_cast %51 : vector<16x8xf32> to vector<1x16x8xf32>
    %56 = tpu.concatenate %52, %53, %54, %55 in 0 : vector<1x16x8xf32>, vector<1x16x8xf32>, vector<1x16x8xf32>, vector<1x16x8xf32> -> vector<4x16x8xf32>
    %57 = vector.extract_strided_slice %38 {offsets = [0, 64], sizes = [16, 8], strides = [1, 1]} : vector<16x96xf32> to vector<16x8xf32>
    %58 = vector.extract_strided_slice %38 {offsets = [0, 72], sizes = [16, 8], strides = [1, 1]} : vector<16x96xf32> to vector<16x8xf32>
    %59 = vector.extract_strided_slice %38 {offsets = [0, 80], sizes = [16, 8], strides = [1, 1]} : vector<16x96xf32> to vector<16x8xf32>
    %60 = vector.extract_strided_slice %38 {offsets = [0, 88], sizes = [16, 8], strides = [1, 1]} : vector<16x96xf32> to vector<16x8xf32>
    %61 = vector.shape_cast %57 : vector<16x8xf32> to vector<1x16x8xf32>
    %62 = vector.shape_cast %58 : vector<16x8xf32> to vector<1x16x8xf32>
    %63 = vector.shape_cast %59 : vector<16x8xf32> to vector<1x16x8xf32>
    %64 = vector.shape_cast %60 : vector<16x8xf32> to vector<1x16x8xf32>
    %65 = tpu.concatenate %61, %62, %63, %64 in 0 : vector<1x16x8xf32>, vector<1x16x8xf32>, vector<1x16x8xf32>, vector<1x16x8xf32> -> vector<4x16x8xf32>
    %66 = arith.truncf %56 : vector<4x16x8xf32> to vector<4x16x8xbf16>
    %67 = arith.truncf %47 : vector<4x16x8xf32> to vector<4x16x8xbf16>
    "tpu.trace_start"() <{level = 10 : i32, message = "hkd,hqd->hkq"}> : () -> ()
    %cst_17 = arith.constant dense<0.000000e+00> : vector<4x16x16xf32>
    %68 = tpu.matmul %66, %67, %cst_17 {dimension_numbers = #tpu.dot_dimension_numbers<[2], [2], [1], [1], [0, 0, 0, 1, 1, 1], [0], [0]>} : vector<4x16x8xbf16>, vector<4x16x8xbf16>, vector<4x16x16xf32> -> vector<4x16x16xf32>
    "tpu.trace_stop"() : () -> ()
    %69 = vector.broadcast %5 : vector<1x16x16xf32> to vector<4x16x16xf32>
    %70 = arith.addf %68, %69 : vector<4x16x16xf32>
    %cst_18 = arith.constant 0.353553385 : f32
    %71 = vector.broadcast %cst_18 : f32 to vector<4x16x16xf32>
    %72 = arith.mulf %70, %71 : vector<4x16x16xf32>
    %cst_19 = arith.constant dense<0xFF800000> : vector<4x16xf32>
    %73 = vector.multi_reduction <maximumf>, %72, %cst_19 [2] : vector<4x16x16xf32> to vector<4x16xf32>
    %74 = vector.shape_cast %73 : vector<4x16xf32> to vector<4x16x1xf32>
    %75 = vector.broadcast %74 : vector<4x16x1xf32> to vector<4x16x16xf32>
    %76 = arith.subf %72, %75 : vector<4x16x16xf32>
    %77 = math.exp %76 : vector<4x16x16xf32>
    %cst_20 = arith.constant dense<0.000000e+00> : vector<4x16xf32>
    %78 = vector.multi_reduction <add>, %77, %cst_20 [2] : vector<4x16x16xf32> to vector<4x16xf32>
    %79 = vector.shape_cast %78 : vector<4x16xf32> to vector<4x16x1xf32>
    %80 = tpu.reciprocal %79 {approx = true} : vector<4x16x1xf32> -> vector<4x16x1xf32>
    %81 = vector.broadcast %80 : vector<4x16x1xf32> to vector<4x16x16xf32>
    %82 = arith.mulf %77, %81 : vector<4x16x16xf32>
    %83 = arith.truncf %82 : vector<4x16x16xf32> to vector<4x16x16xbf16>
    %84 = arith.truncf %65 : vector<4x16x8xf32> to vector<4x16x8xbf16>
    "tpu.trace_start"() <{level = 10 : i32, message = "hkq,hqd->hkd"}> : () -> ()
    %cst_21 = arith.constant dense<0.000000e+00> : vector<4x16x8xf32>
    %85 = tpu.matmul %83, %84, %cst_21 {dimension_numbers = #tpu.dot_dimension_numbers<[2], [1], [1], [2], [0, 0, 0, 1, 1, 2], [0], [0]>} : vector<4x16x16xbf16>, vector<4x16x8xbf16>, vector<4x16x8xf32> -> vector<4x16x8xf32>
    "tpu.trace_stop"() : () -> ()
    %c0_22 = arith.constant 0 : index
    %c0_23 = arith.constant 0 : index
    %c0_24 = arith.constant 0 : index
    %c0_25 = arith.constant 0 : index
    %86 = vector.load %arg6[%c0_22, %c0_23, %c0_24, %c0_25] : memref<2x4x8x32xbf16, #tpu.memory_space<vmem>>, vector<1x4x8x32xbf16>
    %87 = vector.shape_cast %86 : vector<1x4x8x32xbf16> to vector<4x8x32xbf16>
    %88 = arith.truncf %85 : vector<4x16x8xf32> to vector<4x16x8xbf16>
    "tpu.trace_start"() <{level = 10 : i32, message = "hkd,hde->hke"}> : () -> ()
    %cst_26 = arith.constant dense<0.000000e+00> : vector<4x16x32xf32>
    %89 = tpu.matmul %88, %87, %cst_26 {dimension_numbers = #tpu.dot_dimension_numbers<[2], [1], [1], [2], [0, 0, 0, 1, 1, 2], [0], [0]>} : vector<4x16x8xbf16>, vector<4x8x32xbf16>, vector<4x16x32xf32> -> vector<4x16x32xf32>
    "tpu.trace_stop"() : () -> ()
    %90 = vector.extract_strided_slice %89 {offsets = [0, 0, 0], sizes = [1, 16, 32], strides = [1, 1, 1]} : vector<4x16x32xf32> to vector<1x16x32xf32>
    %91 = vector.shape_cast %90 : vector<1x16x32xf32> to vector<16x32xf32>
    %92 = vector.extract_strided_slice %89 {offsets = [1, 0, 0], sizes = [1, 16, 32], strides = [1, 1, 1]} : vector<4x16x32xf32> to vector<1x16x32xf32>
    %93 = vector.shape_cast %92 : vector<1x16x32xf32> to vector<16x32xf32>
    %94 = arith.addf %91, %93 : vector<16x32xf32>
    %95 = vector.extract_strided_slice %89 {offsets = [2, 0, 0], sizes = [1, 16, 32], strides = [1, 1, 1]} : vector<4x16x32xf32> to vector<1x16x32xf32>
    %96 = vector.shape_cast %95 : vector<1x16x32xf32> to vector<16x32xf32>
    %97 = arith.addf %94, %96 : vector<16x32xf32>
    %98 = vector.extract_strided_slice %89 {offsets = [3, 0, 0], sizes = [1, 16, 32], strides = [1, 1, 1]} : vector<4x16x32xf32> to vector<1x16x32xf32>
    %99 = vector.shape_cast %98 : vector<1x16x32xf32> to vector<16x32xf32>
    %100 = arith.addf %97, %99 : vector<16x32xf32>
    %101 = arith.addf %4, %100 : vector<16x32xf32>
    %102 = vector.broadcast %12 : vector<1x32xf32> to vector<16x32xf32>
    %103 = arith.addf %101, %102 : vector<16x32xf32>
    %cst_27 = arith.constant dense<0.000000e+00> : vector<16xf32>
    %104 = vector.multi_reduction <add>, %103, %cst_27 [1] : vector<16x32xf32> to vector<16xf32>
    %105 = vector.shape_cast %104 : vector<16xf32> to vector<16x1xf32>
    %cst_28 = arith.constant 3.200000e+01 : f32
    %106 = vector.broadcast %cst_28 : f32 to vector<16x1xf32>
    %107 = arith.divf %105, %106 : vector<16x1xf32>
    %108 = vector.broadcast %107 : vector<16x1xf32> to vector<16x32xf32>
    %109 = arith.subf %103, %108 : vector<16x32xf32>
    %110 = arith.mulf %109, %109 : vector<16x32xf32>
    %cst_29 = arith.constant dense<0.000000e+00> : vector<16xf32>
    %111 = vector.multi_reduction <add>, %110, %cst_29 [1] : vector<16x32xf32> to vector<16xf32>
    %112 = vector.shape_cast %111 : vector<16xf32> to vector<16x1xf32>
    %cst_30 = arith.constant 0.0322580636 : f32
    %113 = vector.broadcast %cst_30 : f32 to vector<16x1xf32>
    %114 = arith.mulf %112, %113 : vector<16x1xf32>
    %115 = math.sqrt %114 : vector<16x1xf32>
    %cst_31 = arith.constant 9.99999974E-6 : f32
    %116 = vector.broadcast %cst_31 : f32 to vector<16x1xf32>
    %117 = arith.addf %115, %116 : vector<16x1xf32>
    %118 = tpu.reciprocal %117 {approx = true} : vector<16x1xf32> -> vector<16x1xf32>
    %119 = vector.broadcast %118 : vector<16x1xf32> to vector<16x32xf32>
    %120 = arith.mulf %109, %119 : vector<16x32xf32>
    %121 = vector.broadcast %10 : vector<1x32xf32> to vector<16x32xf32>
    %122 = arith.mulf %121, %120 : vector<16x32xf32>
    %123 = vector.broadcast %11 : vector<1x32xf32> to vector<16x32xf32>
    %124 = arith.addf %122, %123 : vector<16x32xf32>
    %c0_32 = arith.constant 0 : index
    %c0_33 = arith.constant 0 : index
    %c0_34 = arith.constant 0 : index
    %125 = vector.load %arg7[%c0_32, %c0_33, %c0_34] : memref<2x32x128xbf16, #tpu.memory_space<vmem>>, vector<1x32x128xbf16>
    %126 = vector.shape_cast %125 : vector<1x32x128xbf16> to vector<32x128xbf16>
    %127 = arith.truncf %124 : vector<16x32xf32> to vector<16x32xbf16>
    %cst_35 = arith.constant dense<0.000000e+00> : vector<16x128xf32>
    %128 = tpu.matmul %127, %126, %cst_35 {dimension_numbers = #tpu.dot_dimension_numbers<[1], [0], [0], [1], [0, 0, 1, 1], [], []>} : vector<16x32xbf16>, vector<32x128xbf16>, vector<16x128xf32> -> vector<16x128xf32>
    %c0_36 = arith.constant 0 : index
    %c0_37 = arith.constant 0 : index
    %c0_38 = arith.constant 0 : index
    %129 = vector.load %arg8[%c0_36, %c0_37, %c0_38] : memref<2x1x128xf32, #tpu.memory_space<vmem>>, vector<1x1x128xf32>
    %130 = vector.shape_cast %129 : vector<1x1x128xf32> to vector<1x128xf32>
    %131 = vector.broadcast %130 : vector<1x128xf32> to vector<16x128xf32>
    %132 = arith.addf %128, %131 : vector<16x128xf32>
    %cst_39 = arith.constant 5.000000e-01 : f32
    %133 = vector.broadcast %cst_39 : f32 to vector<16x128xf32>
    %134 = arith.mulf %133, %132 : vector<16x128xf32>
    %135 = arith.mulf %132, %132 : vector<16x128xf32>
    %136 = arith.mulf %132, %135 : vector<16x128xf32>
    %cst_40 = arith.constant 4.471500e-02 : f32
    %137 = vector.broadcast %cst_40 : f32 to vector<16x128xf32>
    %138 = arith.mulf %137, %136 : vector<16x128xf32>
    %139 = arith.addf %132, %138 : vector<16x128xf32>
    %cst_41 = arith.constant 0.797884583 : f32
    %140 = vector.broadcast %cst_41 : f32 to vector<16x128xf32>
    %141 = arith.mulf %140, %139 : vector<16x128xf32>
    %142 = math.tanh %141 : vector<16x128xf32>
    %cst_42 = arith.constant 1.000000e+00 : f32
    %143 = vector.broadcast %cst_42 : f32 to vector<16x128xf32>
    %144 = arith.addf %143, %142 : vector<16x128xf32>
    %145 = arith.mulf %134, %144 : vector<16x128xf32>
    %c0_43 = arith.constant 0 : index
    %c0_44 = arith.constant 0 : index
    %c0_45 = arith.constant 0 : index
    %146 = vector.load %arg9[%c0_43, %c0_44, %c0_45] : memref<2x128x32xbf16, #tpu.memory_space<vmem>>, vector<1x128x32xbf16>
    %147 = vector.shape_cast %146 : vector<1x128x32xbf16> to vector<128x32xbf16>
    %148 = arith.truncf %145 : vector<16x128xf32> to vector<16x128xbf16>
    %cst_46 = arith.constant dense<0.000000e+00> : vector<16x32xf32>
    %149 = tpu.matmul %148, %147, %cst_46 {dimension_numbers = #tpu.dot_dimension_numbers<[1], [0], [0], [1], [0, 0, 1, 1], [], []>} : vector<16x128xbf16>, vector<128x32xbf16>, vector<16x32xf32> -> vector<16x32xf32>
    %150 = arith.addf %103, %149 : vector<16x32xf32>
    %151 = vector.broadcast %13 : vector<1x32xf32> to vector<16x32xf32>
    %152 = arith.addf %150, %151 : vector<16x32xf32>
    %c1 = arith.constant 1 : index
    %c0_47 = arith.constant 0 : index
    %c0_48 = arith.constant 0 : index
    %153 = vector.load %arg4[%c1, %c0_47, %c0_48] : memref<2x6x32xf32, #tpu.memory_space<vmem>>, vector<1x6x32xf32>
    %154 = vector.shape_cast %153 : vector<1x6x32xf32> to vector<6x32xf32>
    %155 = vector.extract_strided_slice %154 {offsets = [0, 0], sizes = [1, 32], strides = [1, 1]} : vector<6x32xf32> to vector<1x32xf32>
    %156 = vector.extract_strided_slice %154 {offsets = [1, 0], sizes = [1, 32], strides = [1, 1]} : vector<6x32xf32> to vector<1x32xf32>
    %157 = vector.extract_strided_slice %154 {offsets = [2, 0], sizes = [1, 32], strides = [1, 1]} : vector<6x32xf32> to vector<1x32xf32>
    %158 = vector.extract_strided_slice %154 {offsets = [3, 0], sizes = [1, 32], strides = [1, 1]} : vector<6x32xf32> to vector<1x32xf32>
    %159 = vector.extract_strided_slice %154 {offsets = [4, 0], sizes = [1, 32], strides = [1, 1]} : vector<6x32xf32> to vector<1x32xf32>
    %160 = vector.extract_strided_slice %154 {offsets = [5, 0], sizes = [1, 32], strides = [1, 1]} : vector<6x32xf32> to vector<1x32xf32>
    %cst_49 = arith.constant dense<0.000000e+00> : vector<16xf32>
    %161 = vector.multi_reduction <add>, %152, %cst_49 [1] : vector<16x32xf32> to vector<16xf32>
    %162 = vector.shape_cast %161 : vector<16xf32> to vector<16x1xf32>
    %cst_50 = arith.constant 3.200000e+01 : f32
    %163 = vector.broadcast %cst_50 : f32 to vector<16x1xf32>
    %164 = arith.divf %162, %163 : vector<16x1xf32>
    %165 = vector.broadcast %164 : vector<16x1xf32> to vector<16x32xf32>
    %166 = arith.subf %152, %165 : vector<16x32xf32>
    %167 = arith.mulf %166, %166 : vector<16x32xf32>
    %cst_51 = arith.constant dense<0.000000e+00> : vector<16xf32>
    %168 = vector.multi_reduction <add>, %167, %cst_51 [1] : vector<16x32xf32> to vector<16xf32>
    %169 = vector.shape_cast %168 : vector<16xf32> to vector<16x1xf32>
    %cst_52 = arith.constant 0.0322580636 : f32
    %170 = vector.broadcast %cst_52 : f32 to vector<16x1xf32>
    %171 = arith.mulf %169, %170 : vector<16x1xf32>
    %172 = math.sqrt %171 : vector<16x1xf32>
    %cst_53 = arith.constant 9.99999974E-6 : f32
    %173 = vector.broadcast %cst_53 : f32 to vector<16x1xf32>
    %174 = arith.addf %172, %173 : vector<16x1xf32>
    %175 = tpu.reciprocal %174 {approx = true} : vector<16x1xf32> -> vector<16x1xf32>
    %176 = vector.broadcast %175 : vector<16x1xf32> to vector<16x32xf32>
    %177 = arith.mulf %166, %176 : vector<16x32xf32>
    %178 = vector.broadcast %155 : vector<1x32xf32> to vector<16x32xf32>
    %179 = arith.mulf %178, %177 : vector<16x32xf32>
    %180 = vector.broadcast %156 : vector<1x32xf32> to vector<16x32xf32>
    %181 = arith.addf %179, %180 : vector<16x32xf32>
    %c1_54 = arith.constant 1 : index
    %c0_55 = arith.constant 0 : index
    %c0_56 = arith.constant 0 : index
    %182 = vector.load %arg5[%c1_54, %c0_55, %c0_56] : memref<2x32x96xbf16, #tpu.memory_space<vmem>>, vector<1x32x96xbf16>
    %183 = vector.shape_cast %182 : vector<1x32x96xbf16> to vector<32x96xbf16>
    %184 = arith.truncf %181 : vector<16x32xf32> to vector<16x32xbf16>
    %cst_57 = arith.constant dense<0.000000e+00> : vector<16x96xf32>
    %185 = tpu.matmul %184, %183, %cst_57 {dimension_numbers = #tpu.dot_dimension_numbers<[1], [0], [0], [1], [0, 0, 1, 1], [], []>} : vector<16x32xbf16>, vector<32x96xbf16>, vector<16x96xf32> -> vector<16x96xf32>
    %186 = vector.extract_strided_slice %185 {offsets = [0, 0], sizes = [16, 8], strides = [1, 1]} : vector<16x96xf32> to vector<16x8xf32>
    %187 = vector.extract_strided_slice %185 {offsets = [0, 8], sizes = [16, 8], strides = [1, 1]} : vector<16x96xf32> to vector<16x8xf32>
    %188 = vector.extract_strided_slice %185 {offsets = [0, 16], sizes = [16, 8], strides = [1, 1]} : vector<16x96xf32> to vector<16x8xf32>
    %189 = vector.extract_strided_slice %185 {offsets = [0, 24], sizes = [16, 8], strides = [1, 1]} : vector<16x96xf32> to vector<16x8xf32>
    %190 = vector.shape_cast %186 : vector<16x8xf32> to vector<1x16x8xf32>
    %191 = vector.shape_cast %187 : vector<16x8xf32> to vector<1x16x8xf32>
    %192 = vector.shape_cast %188 : vector<16x8xf32> to vector<1x16x8xf32>
    %193 = vector.shape_cast %189 : vector<16x8xf32> to vector<1x16x8xf32>
    %194 = tpu.concatenate %190, %191, %192, %193 in 0 : vector<1x16x8xf32>, vector<1x16x8xf32>, vector<1x16x8xf32>, vector<1x16x8xf32> -> vector<4x16x8xf32>
    %195 = vector.extract_strided_slice %185 {offsets = [0, 32], sizes = [16, 8], strides = [1, 1]} : vector<16x96xf32> to vector<16x8xf32>
    %196 = vector.extract_strided_slice %185 {offsets = [0, 40], sizes = [16, 8], strides = [1, 1]} : vector<16x96xf32> to vector<16x8xf32>
    %197 = vector.extract_strided_slice %185 {offsets = [0, 48], sizes = [16, 8], strides = [1, 1]} : vector<16x96xf32> to vector<16x8xf32>
    %198 = vector.extract_strided_slice %185 {offsets = [0, 56], sizes = [16, 8], strides = [1, 1]} : vector<16x96xf32> to vector<16x8xf32>
    %199 = vector.shape_cast %195 : vector<16x8xf32> to vector<1x16x8xf32>
    %200 = vector.shape_cast %196 : vector<16x8xf32> to vector<1x16x8xf32>
    %201 = vector.shape_cast %197 : vector<16x8xf32> to vector<1x16x8xf32>
    %202 = vector.shape_cast %198 : vector<16x8xf32> to vector<1x16x8xf32>
    %203 = tpu.concatenate %199, %200, %201, %202 in 0 : vector<1x16x8xf32>, vector<1x16x8xf32>, vector<1x16x8xf32>, vector<1x16x8xf32> -> vector<4x16x8xf32>
    %204 = vector.extract_strided_slice %185 {offsets = [0, 64], sizes = [16, 8], strides = [1, 1]} : vector<16x96xf32> to vector<16x8xf32>
    %205 = vector.extract_strided_slice %185 {offsets = [0, 72], sizes = [16, 8], strides = [1, 1]} : vector<16x96xf32> to vector<16x8xf32>
    %206 = vector.extract_strided_slice %185 {offsets = [0, 80], sizes = [16, 8], strides = [1, 1]} : vector<16x96xf32> to vector<16x8xf32>
    %207 = vector.extract_strided_slice %185 {offsets = [0, 88], sizes = [16, 8], strides = [1, 1]} : vector<16x96xf32> to vector<16x8xf32>
    %208 = vector.shape_cast %204 : vector<16x8xf32> to vector<1x16x8xf32>
    %209 = vector.shape_cast %205 : vector<16x8xf32> to vector<1x16x8xf32>
    %210 = vector.shape_cast %206 : vector<16x8xf32> to vector<1x16x8xf32>
    %211 = vector.shape_cast %207 : vector<16x8xf32> to vector<1x16x8xf32>
    %212 = tpu.concatenate %208, %209, %210, %211 in 0 : vector<1x16x8xf32>, vector<1x16x8xf32>, vector<1x16x8xf32>, vector<1x16x8xf32> -> vector<4x16x8xf32>
    %213 = arith.truncf %203 : vector<4x16x8xf32> to vector<4x16x8xbf16>
    %214 = arith.truncf %194 : vector<4x16x8xf32> to vector<4x16x8xbf16>
    "tpu.trace_start"() <{level = 10 : i32, message = "hkd,hqd->hkq"}> : () -> ()
    %cst_58 = arith.constant dense<0.000000e+00> : vector<4x16x16xf32>
    %215 = tpu.matmul %213, %214, %cst_58 {dimension_numbers = #tpu.dot_dimension_numbers<[2], [2], [1], [1], [0, 0, 0, 1, 1, 1], [0], [0]>} : vector<4x16x8xbf16>, vector<4x16x8xbf16>, vector<4x16x16xf32> -> vector<4x16x16xf32>
    "tpu.trace_stop"() : () -> ()
    %216 = vector.broadcast %5 : vector<1x16x16xf32> to vector<4x16x16xf32>
    %217 = arith.addf %215, %216 : vector<4x16x16xf32>
    %cst_59 = arith.constant 0.353553385 : f32
    %218 = vector.broadcast %cst_59 : f32 to vector<4x16x16xf32>
    %219 = arith.mulf %217, %218 : vector<4x16x16xf32>
    %cst_60 = arith.constant dense<0xFF800000> : vector<4x16xf32>
    %220 = vector.multi_reduction <maximumf>, %219, %cst_60 [2] : vector<4x16x16xf32> to vector<4x16xf32>
    %221 = vector.shape_cast %220 : vector<4x16xf32> to vector<4x16x1xf32>
    %222 = vector.broadcast %221 : vector<4x16x1xf32> to vector<4x16x16xf32>
    %223 = arith.subf %219, %222 : vector<4x16x16xf32>
    %224 = math.exp %223 : vector<4x16x16xf32>
    %cst_61 = arith.constant dense<0.000000e+00> : vector<4x16xf32>
    %225 = vector.multi_reduction <add>, %224, %cst_61 [2] : vector<4x16x16xf32> to vector<4x16xf32>
    %226 = vector.shape_cast %225 : vector<4x16xf32> to vector<4x16x1xf32>
    %227 = tpu.reciprocal %226 {approx = true} : vector<4x16x1xf32> -> vector<4x16x1xf32>
    %228 = vector.broadcast %227 : vector<4x16x1xf32> to vector<4x16x16xf32>
    %229 = arith.mulf %224, %228 : vector<4x16x16xf32>
    %230 = arith.truncf %229 : vector<4x16x16xf32> to vector<4x16x16xbf16>
    %231 = arith.truncf %212 : vector<4x16x8xf32> to vector<4x16x8xbf16>
    "tpu.trace_start"() <{level = 10 : i32, message = "hkq,hqd->hkd"}> : () -> ()
    %cst_62 = arith.constant dense<0.000000e+00> : vector<4x16x8xf32>
    %232 = tpu.matmul %230, %231, %cst_62 {dimension_numbers = #tpu.dot_dimension_numbers<[2], [1], [1], [2], [0, 0, 0, 1, 1, 2], [0], [0]>} : vector<4x16x16xbf16>, vector<4x16x8xbf16>, vector<4x16x8xf32> -> vector<4x16x8xf32>
    "tpu.trace_stop"() : () -> ()
    %c1_63 = arith.constant 1 : index
    %c0_64 = arith.constant 0 : index
    %c0_65 = arith.constant 0 : index
    %c0_66 = arith.constant 0 : index
    %233 = vector.load %arg6[%c1_63, %c0_64, %c0_65, %c0_66] : memref<2x4x8x32xbf16, #tpu.memory_space<vmem>>, vector<1x4x8x32xbf16>
    %234 = vector.shape_cast %233 : vector<1x4x8x32xbf16> to vector<4x8x32xbf16>
    %235 = arith.truncf %232 : vector<4x16x8xf32> to vector<4x16x8xbf16>
    "tpu.trace_start"() <{level = 10 : i32, message = "hkd,hde->hke"}> : () -> ()
    %cst_67 = arith.constant dense<0.000000e+00> : vector<4x16x32xf32>
    %236 = tpu.matmul %235, %234, %cst_67 {dimension_numbers = #tpu.dot_dimension_numbers<[2], [1], [1], [2], [0, 0, 0, 1, 1, 2], [0], [0]>} : vector<4x16x8xbf16>, vector<4x8x32xbf16>, vector<4x16x32xf32> -> vector<4x16x32xf32>
    "tpu.trace_stop"() : () -> ()
    %237 = vector.extract_strided_slice %236 {offsets = [0, 0, 0], sizes = [1, 16, 32], strides = [1, 1, 1]} : vector<4x16x32xf32> to vector<1x16x32xf32>
    %238 = vector.shape_cast %237 : vector<1x16x32xf32> to vector<16x32xf32>
    %239 = vector.extract_strided_slice %236 {offsets = [1, 0, 0], sizes = [1, 16, 32], strides = [1, 1, 1]} : vector<4x16x32xf32> to vector<1x16x32xf32>
    %240 = vector.shape_cast %239 : vector<1x16x32xf32> to vector<16x32xf32>
    %241 = arith.addf %238, %240 : vector<16x32xf32>
    %242 = vector.extract_strided_slice %236 {offsets = [2, 0, 0], sizes = [1, 16, 32], strides = [1, 1, 1]} : vector<4x16x32xf32> to vector<1x16x32xf32>
    %243 = vector.shape_cast %242 : vector<1x16x32xf32> to vector<16x32xf32>
    %244 = arith.addf %241, %243 : vector<16x32xf32>
    %245 = vector.extract_strided_slice %236 {offsets = [3, 0, 0], sizes = [1, 16, 32], strides = [1, 1, 1]} : vector<4x16x32xf32> to vector<1x16x32xf32>
    %246 = vector.shape_cast %245 : vector<1x16x32xf32> to vector<16x32xf32>
    %247 = arith.addf %244, %246 : vector<16x32xf32>
    %248 = arith.addf %152, %247 : vector<16x32xf32>
    %249 = vector.broadcast %159 : vector<1x32xf32> to vector<16x32xf32>
    %250 = arith.addf %248, %249 : vector<16x32xf32>
    %cst_68 = arith.constant dense<0.000000e+00> : vector<16xf32>
    %251 = vector.multi_reduction <add>, %250, %cst_68 [1] : vector<16x32xf32> to vector<16xf32>
    %252 = vector.shape_cast %251 : vector<16xf32> to vector<16x1xf32>
    %cst_69 = arith.constant 3.200000e+01 : f32
    %253 = vector.broadcast %cst_69 : f32 to vector<16x1xf32>
    %254 = arith.divf %252, %253 : vector<16x1xf32>
    %255 = vector.broadcast %254 : vector<16x1xf32> to vector<16x32xf32>
    %256 = arith.subf %250, %255 : vector<16x32xf32>
    %257 = arith.mulf %256, %256 : vector<16x32xf32>
    %cst_70 = arith.constant dense<0.000000e+00> : vector<16xf32>
    %258 = vector.multi_reduction <add>, %257, %cst_70 [1] : vector<16x32xf32> to vector<16xf32>
    %259 = vector.shape_cast %258 : vector<16xf32> to vector<16x1xf32>
    %cst_71 = arith.constant 0.0322580636 : f32
    %260 = vector.broadcast %cst_71 : f32 to vector<16x1xf32>
    %261 = arith.mulf %259, %260 : vector<16x1xf32>
    %262 = math.sqrt %261 : vector<16x1xf32>
    %cst_72 = arith.constant 9.99999974E-6 : f32
    %263 = vector.broadcast %cst_72 : f32 to vector<16x1xf32>
    %264 = arith.addf %262, %263 : vector<16x1xf32>
    %265 = tpu.reciprocal %264 {approx = true} : vector<16x1xf32> -> vector<16x1xf32>
    %266 = vector.broadcast %265 : vector<16x1xf32> to vector<16x32xf32>
    %267 = arith.mulf %256, %266 : vector<16x32xf32>
    %268 = vector.broadcast %157 : vector<1x32xf32> to vector<16x32xf32>
    %269 = arith.mulf %268, %267 : vector<16x32xf32>
    %270 = vector.broadcast %158 : vector<1x32xf32> to vector<16x32xf32>
    %271 = arith.addf %269, %270 : vector<16x32xf32>
    %c1_73 = arith.constant 1 : index
    %c0_74 = arith.constant 0 : index
    %c0_75 = arith.constant 0 : index
    %272 = vector.load %arg7[%c1_73, %c0_74, %c0_75] : memref<2x32x128xbf16, #tpu.memory_space<vmem>>, vector<1x32x128xbf16>
    %273 = vector.shape_cast %272 : vector<1x32x128xbf16> to vector<32x128xbf16>
    %274 = arith.truncf %271 : vector<16x32xf32> to vector<16x32xbf16>
    %cst_76 = arith.constant dense<0.000000e+00> : vector<16x128xf32>
    %275 = tpu.matmul %274, %273, %cst_76 {dimension_numbers = #tpu.dot_dimension_numbers<[1], [0], [0], [1], [0, 0, 1, 1], [], []>} : vector<16x32xbf16>, vector<32x128xbf16>, vector<16x128xf32> -> vector<16x128xf32>
    %c1_77 = arith.constant 1 : index
    %c0_78 = arith.constant 0 : index
    %c0_79 = arith.constant 0 : index
    %276 = vector.load %arg8[%c1_77, %c0_78, %c0_79] : memref<2x1x128xf32, #tpu.memory_space<vmem>>, vector<1x1x128xf32>
    %277 = vector.shape_cast %276 : vector<1x1x128xf32> to vector<1x128xf32>
    %278 = vector.broadcast %277 : vector<1x128xf32> to vector<16x128xf32>
    %279 = arith.addf %275, %278 : vector<16x128xf32>
    %cst_80 = arith.constant 5.000000e-01 : f32
    %280 = vector.broadcast %cst_80 : f32 to vector<16x128xf32>
    %281 = arith.mulf %280, %279 : vector<16x128xf32>
    %282 = arith.mulf %279, %279 : vector<16x128xf32>
    %283 = arith.mulf %279, %282 : vector<16x128xf32>
    %cst_81 = arith.constant 4.471500e-02 : f32
    %284 = vector.broadcast %cst_81 : f32 to vector<16x128xf32>
    %285 = arith.mulf %284, %283 : vector<16x128xf32>
    %286 = arith.addf %279, %285 : vector<16x128xf32>
    %cst_82 = arith.constant 0.797884583 : f32
    %287 = vector.broadcast %cst_82 : f32 to vector<16x128xf32>
    %288 = arith.mulf %287, %286 : vector<16x128xf32>
    %289 = math.tanh %288 : vector<16x128xf32>
    %cst_83 = arith.constant 1.000000e+00 : f32
    %290 = vector.broadcast %cst_83 : f32 to vector<16x128xf32>
    %291 = arith.addf %290, %289 : vector<16x128xf32>
    %292 = arith.mulf %281, %291 : vector<16x128xf32>
    %c1_84 = arith.constant 1 : index
    %c0_85 = arith.constant 0 : index
    %c0_86 = arith.constant 0 : index
    %293 = vector.load %arg9[%c1_84, %c0_85, %c0_86] : memref<2x128x32xbf16, #tpu.memory_space<vmem>>, vector<1x128x32xbf16>
    %294 = vector.shape_cast %293 : vector<1x128x32xbf16> to vector<128x32xbf16>
    %295 = arith.truncf %292 : vector<16x128xf32> to vector<16x128xbf16>
    %cst_87 = arith.constant dense<0.000000e+00> : vector<16x32xf32>
    %296 = tpu.matmul %295, %294, %cst_87 {dimension_numbers = #tpu.dot_dimension_numbers<[1], [0], [0], [1], [0, 0, 1, 1], [], []>} : vector<16x128xbf16>, vector<128x32xbf16>, vector<16x32xf32> -> vector<16x32xf32>
    %297 = arith.addf %250, %296 : vector<16x32xf32>
    %298 = vector.broadcast %160 : vector<1x32xf32> to vector<16x32xf32>
    %299 = arith.addf %297, %298 : vector<16x32xf32>
    %c0_88 = arith.constant 0 : index
    %c0_89 = arith.constant 0 : index
    %300 = vector.load %arg10[%c0_88, %c0_89] : memref<2x32xf32, #tpu.memory_space<vmem>>, vector<2x32xf32>
    %301 = vector.extract_strided_slice %300 {offsets = [0, 0], sizes = [1, 32], strides = [1, 1]} : vector<2x32xf32> to vector<1x32xf32>
    %302 = vector.extract_strided_slice %300 {offsets = [1, 0], sizes = [1, 32], strides = [1, 1]} : vector<2x32xf32> to vector<1x32xf32>
    %cst_90 = arith.constant dense<0.000000e+00> : vector<16xf32>
    %303 = vector.multi_reduction <add>, %299, %cst_90 [1] : vector<16x32xf32> to vector<16xf32>
    %304 = vector.shape_cast %303 : vector<16xf32> to vector<16x1xf32>
    %cst_91 = arith.constant 3.200000e+01 : f32
    %305 = vector.broadcast %cst_91 : f32 to vector<16x1xf32>
    %306 = arith.divf %304, %305 : vector<16x1xf32>
    %307 = vector.broadcast %306 : vector<16x1xf32> to vector<16x32xf32>
    %308 = arith.subf %299, %307 : vector<16x32xf32>
    %309 = arith.mulf %308, %308 : vector<16x32xf32>
    %cst_92 = arith.constant dense<0.000000e+00> : vector<16xf32>
    %310 = vector.multi_reduction <add>, %309, %cst_92 [1] : vector<16x32xf32> to vector<16xf32>
    %311 = vector.shape_cast %310 : vector<16xf32> to vector<16x1xf32>
    %cst_93 = arith.constant 0.0322580636 : f32
    %312 = vector.broadcast %cst_93 : f32 to vector<16x1xf32>
    %313 = arith.mulf %311, %312 : vector<16x1xf32>
    %314 = math.sqrt %313 : vector<16x1xf32>
    %cst_94 = arith.constant 9.99999974E-6 : f32
    %315 = vector.broadcast %cst_94 : f32 to vector<16x1xf32>
    %316 = arith.addf %314, %315 : vector<16x1xf32>
    %317 = tpu.reciprocal %316 {approx = true} : vector<16x1xf32> -> vector<16x1xf32>
    %318 = vector.broadcast %317 : vector<16x1xf32> to vector<16x32xf32>
    %319 = arith.mulf %308, %318 : vector<16x32xf32>
    %320 = vector.broadcast %301 : vector<1x32xf32> to vector<16x32xf32>
    %321 = arith.mulf %320, %319 : vector<16x32xf32>
    %322 = vector.broadcast %302 : vector<1x32xf32> to vector<16x32xf32>
    %323 = arith.addf %321, %322 : vector<16x32xf32>
    %c0_95 = arith.constant 0 : index
    %c0_96 = arith.constant 0 : index
    %324 = vector.load %arg11[%c0_95, %c0_96] : memref<32x128xbf16, #tpu.memory_space<vmem>>, vector<32x128xbf16>
    %325 = arith.truncf %323 : vector<16x32xf32> to vector<16x32xbf16>
    %cst_97 = arith.constant dense<0.000000e+00> : vector<16x128xf32>
    %326 = tpu.matmul %325, %324, %cst_97 {dimension_numbers = #tpu.dot_dimension_numbers<[1], [0], [0], [1], [0, 0, 1, 1], [], []>} : vector<16x32xbf16>, vector<32x128xbf16>, vector<16x128xf32> -> vector<16x128xf32>
    %c0_98 = arith.constant 0 : index
    %c0_99 = arith.constant 0 : index
    %327 = vector.load %arg12[%c0_98, %c0_99] : memref<16x128xf32, #tpu.memory_space<vmem>>, vector<16x128xf32>
    tpu.vector_store %arg12[%c0_98, %c0_99], %326 {strides = array<i32>} : memref<16x128xf32, #tpu.memory_space<vmem>>, vector<16x128xf32>,
    return
  }
  func.func @transform_0(%arg0: i32) -> (i32, i32) {
    %c0_i32 = arith.constant 0 : i32
    %c0_i32_0 = arith.constant 0 : i32
    %c0_i32_1 = arith.constant 0 : i32
    return %c0_i32, %c0_i32_0 : i32, i32
  }
  func.func @transform_1(%arg0: i32) -> (i32, i32) {
    %c0_i32 = arith.constant 0 : i32
    %c0_i32_0 = arith.constant 0 : i32
    %c0_i32_1 = arith.constant 0 : i32
    return %c0_i32, %c0_i32_0 : i32, i32
  }
  func.func @transform_2(%arg0: i32) -> (i32, i32, i32) {
    %c0_i32 = arith.constant 0 : i32
    %c0_i32_0 = arith.constant 0 : i32
    %c0_i32_1 = arith.constant 0 : i32
    %c0_i32_2 = arith.constant 0 : i32
    return %c0_i32, %c0_i32_0, %c0_i32_1 : i32, i32, i32
  }
  func.func @transform_3(%arg0: i32) -> (i32, i32, i32) {
    %c0_i32 = arith.constant 0 : i32
    %c0_i32_0 = arith.constant 0 : i32
    %c0_i32_1 = arith.constant 0 : i32
    %c0_i32_2 = arith.constant 0 : i32
    return %c0_i32, %c0_i32_0, %c0_i32_1 : i32, i32, i32
  }
  func.func @transform_4(%arg0: i32) -> (i32, i32, i32) {
    %c0_i32 = arith.constant 0 : i32
    %c0_i32_0 = arith.constant 0 : i32
    %c0_i32_1 = arith.constant 0 : i32
    %c0_i32_2 = arith.constant 0 : i32
    return %c0_i32, %c0_i32_0, %c0_i32_1 : i32, i32, i32
  }
  func.func @transform_5(%arg0: i32) -> (i32, i32, i32, i32) {
    %c0_i32 = arith.constant 0 : i32
    %c0_i32_0 = arith.constant 0 : i32
    %c0_i32_1 = arith.constant 0 : i32
    %c0_i32_2 = arith.constant 0 : i32
    %c0_i32_3 = arith.constant 0 : i32
    return %c0_i32, %c0_i32_0, %c0_i32_1, %c0_i32_2 : i32, i32, i32, i32
  }
  func.func @transform_6(%arg0: i32) -> (i32, i32, i32) {
    %c0_i32 = arith.constant 0 : i32
    %c0_i32_0 = arith.constant 0 : i32
    %c0_i32_1 = arith.constant 0 : i32
    %c0_i32_2 = arith.constant 0 : i32
    return %c0_i32, %c0_i32_0, %c0_i32_1 : i32, i32, i32
  }
  func.func @transform_7(%arg0: i32) -> (i32, i32, i32) {
    %c0_i32 = arith.constant 0 : i32
    %c0_i32_0 = arith.constant 0 : i32
    %c0_i32_1 = arith.constant 0 : i32
    %c0_i32_2 = arith.constant 0 : i32
    return %c0_i32, %c0_i32_0, %c0_i32_1 : i32, i32, i32
  }
  func.func @transform_8(%arg0: i32) -> (i32, i32, i32) {
    %c0_i32 = arith.constant 0 : i32
    %c0_i32_0 = arith.constant 0 : i32
    %c0_i32_1 = arith.constant 0 : i32
    %c0_i32_2 = arith.constant 0 : i32
    return %c0_i32, %c0_i32_0, %c0_i32_1 : i32, i32, i32
  }
  func.func @transform_9(%arg0: i32) -> (i32, i32) {
    %c0_i32 = arith.constant 0 : i32
    %c0_i32_0 = arith.constant 0 : i32
    %c0_i32_1 = arith.constant 0 : i32
    return %c0_i32, %c0_i32_0 : i32, i32
  }
  func.func @transform_10(%arg0: i32) -> (i32, i32) {
    %c0_i32 = arith.constant 0 : i32
    %c0_i32_0 = arith.constant 0 : i32
    %c0_i32_1 = arith.constant 0 : i32
    return %c0_i32, %c0_i32_0 : i32, i32
  }
  func.func @transform_11(%arg0: i32) -> (i32, i32) {
    %c0_i32 = arith.constant 0 : i32
    %c0_i32_0 = arith.constant 0 : i32
    %c0_i32_1 = arith.constant 0 : i32
    return %c0_i32, %c0_i32_0 : i32, i32
  }
}

</mosaic_0001>

<bundles_post_ra>
// kernel: gpt_forward.1
= control target key start
LH: loop header
LB: loop body
LE: loop exit
PB: predicated region body
PF: predicated region fallthrough
CT: control target
= control target key end

     0   :  { %s2521_s0 = inlined_call_operand.vmem [shape: bf16[16,32], index: 0, kind: input, shape index: {}]   ;;  %s2522_s1 = inlined_call_operand.vmem [shape: bf16[16,32], index: 1, kind: input, shape index: {}]   ;;  %s2523_s2 = inlined_call_operand.vmem [shape: f32[1,16,16], index: 2, kind: input, shape index: {}]   ;;  %s2524_s3 = inlined_call_operand.vmem [shape: f32[2,6,32], index: 3, kind: input, shape index: {}]   ;;  %s2525_s4 = inlined_call_operand.vmem [shape: bf16[2,32,96], index: 4, kind: input, shape index: {}]   ;;  %s2526_s5 = inlined_call_operand.vmem [shape: bf16[2,4,8,32], index: 5, kind: input, shape index: {}]   ;;  %s2527_s6 = inlined_call_operand.vmem [shape: bf16[2,32,128], index: 6, kind: input, shape index: {}]   ;;  %s2528_s7 = inlined_call_operand.vmem [shape: f32[2,1,128], index: 7, kind: input, shape index: {}]   ;;  %s2529_s8 = inlined_call_operand.vmem [shape: bf16[2,128,32], index: 8, kind: input, shape index: {}]   ;;  %s2530_s9 = inlined_call_operand.vmem [shape: f32[2,32], index: 9, kind: input, shape index: {}]   ;;  %s2531_s10 = inlined_call_operand.vmem [shape: bf16[32,128], index: 10, kind: input, shape index: {}]   ;;  %s2532_s11 = inlined_call_operand.hbm [shape: f32[16,128], index: 11, kind: output, shape index: {}]  }
   0x1   :  { %v1870_v0 = vld [vmem:[%s2521_s0] sm:$0xff]  }
   0x2   :  { %v1874_v1 = vld [vmem:[%s2522_s1] sm:$0xff]   ;;  %v1871_v2 = vunpack.c.l.bf16 %v1870_v0 }
   0x3   :  { %v1875_v3 = vunpack.c.l.bf16 %v1874_v1 }
   0x4   :  { %16 = vsyncpa [#allocation3], 0  ;;  %vm53_vm0 = vcmask 261120   ;;  %v1872_v5 = vunpack.c.h.bf16 %v1870_v0  ;;  %v1876_v6 = vunpack.c.h.bf16 %v1874_v1  ;;  %v2058_v10 = vmov 32.0   ;;  %v1844_v27 = vld [vmem:[%s2525_s4 + $0x8] sm:$0xff]  ;;  %v1843_v28 = vld [vmem:[%s2525_s4] sm:$0xff] }
   0x5   :  { %v2133_v4 = vadd.f32 %v1875_v3, %v1871_v2  ;;  %1918 = vrcp.f32 %v2058_v10  ;;  %143 = vmatpush.bf16.msra.mxu0 %v1844_v27  ;;  %v2158_v56 = vld [vmem:[%s2524_s3] sm:$0x3f]  ;;  %s2059_s25 = smov 104   ;;  %s2060_s26 = smov 120   ;;  %vm186_vm6 = vcmask 64512   ;;  %vm296_vm7 = vcmask 130048  }
   0x6   :  { %v2137_v8 = vadd.f32 %v1876_v6, %v1872_v5  ;;  %v111_v58 = vperm.slane %v2158_v56, 0  ;;  %v114_v62 = vperm.slane %v2158_v56, 1  ;;  %s2061_s27 = smov 112   ;;  %s2062_s28 = smov 96   ;;  %vm513_vm8 = vcmask 1043456  }
   0x7   :  { %v54_v7 = vsel %vm53_vm0, %v2133_v4, 0.0  ;;  %s2064_s16 = smov [#allocation2]   ;;  %s2065_s19 = smov 128  }
   0x8   :  { %55 = vadd.xlane.f32.xlu0 %v54_v7  ;;  %v57_v9 = vsel %vm53_vm0, %v2137_v8, 0.0 }
   0x9   :  { %144 = vmatpush.bf16.msra.mxu0 %v1843_v28 }
   0xb   :  { %v1919_v11 = vpop.eup %1918 }
   0xc   :  { %v61_v12 = vmul.f32 32.0, %v1919_v11  ;;  %vm65_vm1 = vweird.f32 %v1919_v11 }
   0xe   :  { %v62_v13 = vsub.f32 1.0, %v61_v12 }
  0x10   :  { %58 = vadd.xlane.f32.xlu0 %v57_v9  ;;  %v63_v14 = vmul.f32 %v1919_v11, %v62_v13 }
  0x12   :  { %v64_v15 = vadd.f32 %v1919_v11, %v63_v14 }
  0x14   :  { %v2141_v16 = vsel %vm65_vm1, %v1919_v11, %v64_v15 }
  0x7b   :  { %v56_v17 = vpop.xlane.xlu0 %55 }
  0x7c   :  { %v67_v18 = vmul.f32 %v2141_v16, %v56_v17 }
  0x7e   :  { %v69_v19 = vsub.f32 %v2133_v4, %v67_v18 }
  0x80   :  { %v71_v20 = vmul.f32 %v69_v19, %v69_v19 }
  0x82   :  { %v73_v21 = vsel %vm53_vm0, %v71_v20, 0.0 }
  0x83   :  { %74 = vadd.xlane.f32.xlu1 %v73_v21  ;;  %v59_v22 = vpop.xlane.xlu0 %58 }
  0x84   :  { %v68_v23 = vmul.f32 %v2141_v16, %v59_v22 }
  0x86   :  { %v70_v24 = vsub.f32 %v2137_v8, %v68_v23 }
  0x88   :  { %v72_v25 = vmul.f32 %v70_v24, %v70_v24 }
  0x8a   :  { %v76_v26 = vsel %vm53_vm0, %v72_v25, 0.0 }
  0x8b   :  { %77 = vadd.xlane.f32.xlu1 %v76_v26 }
  0xf6   :  { %v75_v29 = vpop.xlane.xlu1 %74 }
  0xf7   :  { %v79_v30 = vmul.f32 0.032258064, %v75_v29 }
  0xf9   :  { %1920 = vrsqrt.f32 %v79_v30  ;;  %vm88_vm2 = vcmp.eq.f32.partialorder %v79_v30, inf  ;;  %v91_v43 = vand.u32 2147483648, %v79_v30  ;;  %vm90_vm3 = vcmp.eq.f32.partialorder %v79_v30, 0.0 }
  0xfe   :  { %v78_v31 = vpop.xlane.xlu1 %77 }
  0xff   :  { %v1921_v32 = vpop.eup %1920  ;;  %v80_v33 = vmul.f32 0.032258064, %v78_v31 }
 0x100   :  { %v82_v34 = vmul.f32 %v1921_v32, %v79_v30 }
 0x101   :  { %1922 = vrsqrt.f32 %v80_v33  ;;  %vm100_vm4 = vcmp.eq.f32.partialorder %v80_v33, inf  ;;  %v103_v51 = vand.u32 2147483648, %v80_v33  ;;  %vm102_vm5 = vcmp.eq.f32.partialorder %v80_v33, 0.0 }
 0x102   :  { %v83_v35 = vmul.f32 %v1921_v32, %v82_v34 }
 0x104   :  { %v84_v36 = vmul.f32 0.5, %v83_v35 }
 0x106   :  { %v85_v37 = vsub.f32 1.5, %v84_v36 }
 0x107   :  { %v1923_v38 = vpop.eup %1922 }
 0x108   :  { %v94_v39 = vmul.f32 %v1923_v38, %v80_v33  ;;  %v86_v40 = vmul.f32 %v1921_v32, %v85_v37 }
 0x10a   :  { %v95_v41 = vmul.f32 %v1923_v38, %v94_v39  ;;  %v87_v42 = vmul.f32 %v86_v40, %v79_v30 }
 0x10c   :  { %v96_v44 = vmul.f32 0.5, %v95_v41  ;;  %v89_v45 = vsel %vm88_vm2, %v79_v30, %v87_v42 }
 0x10d   :  { %v92_v46 = vsel %vm90_vm3, %v91_v43, %v89_v45 }
 0x10e   :  { %v97_v47 = vsub.f32 1.5, %v96_v44  ;;  %v105_v48 = vadd.f32 1e-05, %v92_v46  ;;  %v2197_v46 = vld [vmem:[%s2523_s2] sm:$0xff] }
 0x110   :  { %v98_v49 = vmul.f32 %v1923_v38, %v97_v47  ;;  %1924 = vrcp.f32 %v105_v48 }
 0x112   :  { %v99_v50 = vmul.f32 %v98_v49, %v80_v33 }
 0x114   :  { %v101_v52 = vsel %vm100_vm4, %v80_v33, %v99_v50 }
 0x115   :  { %v104_v53 = vsel %vm102_vm5, %v103_v51, %v101_v52 }
 0x116   :  { %v106_v54 = vadd.f32 1e-05, %v104_v53  ;;  %v1925_v55 = vpop.eup %1924 }
 0x117   :  { %v109_v57 = vmul.f32 %v1925_v55, %v69_v19  ;;  %v2206_v55 = vld [vmem:[%s2523_s2 + $0x8] sm:$0xff]  ;;  %s2063_s2 = smov 64  }
 0x118   :  { %1926 = vrcp.f32 %v106_v54 }
 0x119   :  { %v112_v61 = vmul.f32 %v111_v58, %v109_v57 }
 0x11b   :  { %v115_v0 = vadd.f32 %v114_v62, %v112_v61 }
 0x11e   :  { %v1927_v59 = vpop.eup %1926 }
 0x11f   :  { %v110_v60 = vmul.f32 %v1927_v59, %v70_v24 }
 0x121   :  { %v113_v63 = vmul.f32 %v111_v58, %v110_v60 }
 0x123   :  { %v116_v1 = vadd.f32 %v114_v62, %v113_v63 }
 0x125   :  { %v121_v2 = vpack.c.bf16 %v116_v1, %v115_v0 }
 0x127   :  { %1688 = vmatmul.msk.bf16.vlgmr.msra.gmra.mxu0 %vm53_vm0, %v121_v2 }
 0x1a4   :  { %v146_v3 = vpop.f32.mrf.mxu0 }
 0x1a5   :  { %v171_v5 = vpack.c.bf16 %v146_v3, %v146_v3 }
 0x1a7   :  { %v181_v10 = vunpack.c.l.b16 %v171_v5 }
 0x1ac   :  { %v148_v6 = vpop.f32.mrf.mxu0 }
 0x1ad   :  { %v172_v7 = vpack.c.bf16 %v148_v6, %v148_v6  ;;  %v1896_v9 = vpack.i.bf16 %v148_v6, %v146_v3 }
 0x1af   :  { %1897 = vrot.lane.b32.xlu0 %v1896_v9, %s2059_s25  ;;  %1887 = vrot.lane.b32.xlu2 %v1896_v9, %s2060_s26  ;;  %v182_v11 = vunpack.c.l.b16 %v172_v7 }
 0x1b1   :  { %v2165_v12 = vpack.c.b16 %v182_v11, %v181_v10 }
 0x1b3   :  { %v191_v13 = vsel %vm186_vm6, %v2165_v12, 0 }
 0x1b4   :  { %200 = vmatpush.bf16.xpose.msra.mxu1 %v191_v13 }
 0x1b7   :  { %1892 = vrot.lane.b32.xlu2 %v1896_v9, %s2061_s27 }
 0x209   :  { %v1888_v14 = vpop.permute.xlu2 %1887 }
 0x20a   :  { %v1890_v15 = vunpack.i.h.bf16 %v1888_v14  ;;  %v1889_v17 = vunpack.i.l.bf16 %v1888_v14 }
 0x20c   :  { %v174_v18 = vpack.c.bf16 %v1890_v15, %v1890_v15  ;;  %v173_v19 = vpack.c.bf16 %v1889_v17, %v1889_v17 }
 0x20e   :  { %v210_v20 = vunpack.c.l.b16 %v174_v18  ;;  %v209_v21 = vunpack.c.l.b16 %v173_v19 }
 0x210   :  { %v2170_v22 = vpack.c.b16 %v210_v20, %v209_v21 }
 0x211   :  { %v1893_v23 = vpop.permute.xlu2 %1892 }
 0x212   :  { %v1895_v24 = vunpack.i.h.bf16 %v1893_v23  ;;  %v1894_v25 = vunpack.i.l.bf16 %v1893_v23  ;;  %212 = vrot.lane.b32.xlu1 %v2170_v22, %s2062_s28  ;;  %v218_v26 = vsel %vm186_vm6, %v2170_v22, 0 }
 0x213   :  { %227 = vmatpush.bf16.xpose.msra.mxu2 %v218_v26 }
 0x214   :  { %v176_v27 = vpack.c.bf16 %v1895_v24, %v1895_v24  ;;  %v175_v28 = vpack.c.bf16 %v1894_v25, %v1894_v25 }
 0x216   :  { %v237_v29 = vunpack.c.l.b16 %v176_v27  ;;  %v236_v30 = vunpack.c.l.b16 %v175_v28 }
 0x218   :  { %v2176_v31 = vpack.c.b16 %v237_v29, %v236_v30 }
 0x21a   :  { %239 = vrot.lane.b32.xlu2 %v2176_v31, %s2062_s28  ;;  %v245_v32 = vsel %vm186_vm6, %v2176_v31, 0 }
 0x21b   :  { %254 = vmatpush.bf16.xpose.msra.mxu3 %v245_v32 }
 0x221   :  { %v1898_v33 = vpop.permute.xlu0 %1897 }
 0x222   :  { %v1900_v34 = vunpack.i.h.bf16 %v1898_v33  ;;  %v1899_v35 = vunpack.i.l.bf16 %v1898_v33  ;;  %184 = vrot.lane.b32.xlu2 %v2165_v12, %s2062_s28 }
 0x224   :  { %v178_v36 = vpack.c.bf16 %v1900_v34, %v1900_v34  ;;  %v177_v37 = vpack.c.bf16 %v1899_v35, %v1899_v35 }
 0x226   :  { %v264_v38 = vunpack.c.l.b16 %v178_v36  ;;  %v263_v39 = vunpack.c.l.b16 %v177_v37 }
 0x228   :  { %v2184_v40 = vpack.c.b16 %v264_v38, %v263_v39 }
 0x22a   :  { %266 = vrot.lane.b32.xlu2 %v2184_v40, %s2062_s28  ;;  %v272_v41 = vsel %vm186_vm6, %v2184_v40, 0 }
 0x22b   :  { %281 = vmatpush.bf16.xpose.msrb.mxu0 %v272_v41 }
 0x274   :  { %v240_v42 = vpop.permute.xlu2 %239 }
 0x275   :  { %1691 = vmatmul.msk.bf16.vlgmr.msra.gmra.mxu3 %vm186_vm6, %v240_v42 }
 0x27c   :  { %v185_v43 = vpop.permute.xlu2 %184 }
 0x27d   :  { %1689 = vmatmul.msk.bf16.vlgmr.msra.gmra.mxu1 %vm186_vm6, %v185_v43 }
 0x284   :  { %v213_v44 = vpop.permute.xlu1 %212  ;;  %v267_v45 = vpop.permute.xlu2 %266 }
 0x285   :  { %1690 = vmatmul.msk.bf16.vlgmr.msra.gmra.mxu2 %vm186_vm6, %v213_v44  ;;  %1692 = vmatmul.msk.bf16.vlgmr.msrb.gmra.mxu0 %vm186_vm6, %v267_v45 }
 0x2f8   :  { %v256_v47 = vpop.f32.mrf.mxu3 }
 0x2f9   :  { %v257_v48 = vadd.f32 %v256_v47, %v2197_v46 }
 0x2fa   :  { %v202_v49 = vpop.f32.mrf.mxu1 }
 0x2fb   :  { %v292_v50 = vmul.f32 0.35355338, %v257_v48  ;;  %v203_v51 = vadd.f32 %v202_v49, %v2197_v46 }
 0x2fd   :  { %v288_v52 = vmul.f32 0.35355338, %v203_v51  ;;  %v309_v53 = vsel %vm296_vm7, %v292_v50, -inf }
 0x2fe   :  { %310 = vmax.xlane.f32.xlu1 %v309_v53 }
 0x2ff   :  { %v297_v54 = vsel %vm296_vm7, %v288_v52, -inf }
 0x300   :  { %298 = vmax.xlane.f32.xlu2 %v297_v54  ;;  %v258_v0 = vpop.f32.mrf.mxu3 }
 0x301   :  { %v259_v2 = vadd.f32 %v258_v0, %v2206_v55 }
 0x302   :  { %v204_v57 = vpop.f32.mrf.mxu1  ;;  %v283_v61 = vpop.f32.mrf.mxu0 }
 0x303   :  { %v205_v58 = vadd.f32 %v204_v57, %v2206_v55  ;;  %v293_v6 = vmul.f32 0.35355338, %v259_v2  ;;  %v284_v11 = vadd.f32 %v283_v61, %v2197_v46 }
 0x305   :  { %v289_v59 = vmul.f32 0.35355338, %v205_v58  ;;  %v312_v14 = vsel %vm296_vm7, %v293_v6, -inf  ;;  %v294_v17 = vmul.f32 0.35355338, %v284_v11 }
 0x307   :  { %v300_v60 = vsel %vm296_vm7, %v289_v59, -inf  ;;  %v315_v19 = vsel %vm296_vm7, %v294_v17, -inf }
 0x308   :  { %v229_v62 = vpop.f32.mrf.mxu2  ;;  %301 = vmax.xlane.f32.xlu1 %v300_v60 }
 0x309   :  { %v230_v63 = vadd.f32 %v229_v62, %v2197_v46 }
 0x30a   :  { %v285_v9 = vpop.f32.mrf.mxu0 }
 0x30b   :  { %v290_v1 = vmul.f32 0.35355338, %v230_v63  ;;  %v286_v13 = vadd.f32 %v285_v9, %v2206_v55 }
 0x30d   :  { %v303_v3 = vsel %vm296_vm7, %v290_v1, -inf  ;;  %v295_v18 = vmul.f32 0.35355338, %v286_v13 }
 0x30e   :  { %304 = vmax.xlane.f32.xlu0 %v303_v3 }
 0x30f   :  { %v318_v20 = vsel %vm296_vm7, %v295_v18, -inf }
 0x310   :  { %v231_v5 = vpop.f32.mrf.mxu2 }
 0x311   :  { %v232_v7 = vadd.f32 %v231_v5, %v2206_v55 }
 0x313   :  { %v291_v10 = vmul.f32 0.35355338, %v232_v7 }
 0x315   :  { %v306_v15 = vsel %vm296_vm7, %v291_v10, -inf }
 0x316   :  { %313 = vmax.xlane.f32.xlu0 %v312_v14  ;;  %307 = vmax.xlane.f32.xlu2 %v306_v15 }
 0x31e   :  { %316 = vmax.xlane.f32.xlu0 %v315_v19  ;;  %319 = vmax.xlane.f32.xlu2 %v318_v20 }
 0x371   :  { %v311_v21 = vpop.xlane.xlu1 %310 }
 0x372   :  { %v325_v28 = vsub.f32 %v292_v50, %v311_v21 }
 0x373   :  { %v299_v23 = vpop.xlane.xlu2 %298 }
 0x374   :  { %v321_v24 = vsub.f32 %v288_v52, %v299_v23  ;;  %v337_v33 = vmul.f32 1.442695, %v325_v28 }
 0x376   :  { %v329_v25 = vmul.f32 1.442695, %v321_v24 }
 0x378   :  { %1928 = vpow2.f32 %v329_v25 }
 0x37b   :  { %v302_v26 = vpop.xlane.xlu1 %301 }
 0x37c   :  { %v322_v27 = vsub.f32 %v289_v59, %v302_v26 }
 0x37e   :  { %v2220_v29 = vpop.eup %1928  ;;  %v331_v30 = vmul.f32 1.442695, %v322_v27 }
 0x37f   :  { %v345_v32 = vsel %vm296_vm7, %v2220_v29, 0.0 }
 0x380   :  { %1930 = vpow2.f32 %v331_v30  ;;  %346 = vadd.xlane.f32.xlu0 %v345_v32 }
 0x381   :  { %v305_v34 = vpop.xlane.xlu0 %304  ;;  %1932 = vpow2.f32 %v337_v33 }
 0x382   :  { %v323_v35 = vsub.f32 %v290_v1, %v305_v34 }
 0x384   :  { %v333_v36 = vmul.f32 1.442695, %v323_v35 }
 0x386   :  { %v2224_v37 = vpop.eup %1930  ;;  %1934 = vpow2.f32 %v333_v36 }
 0x387   :  { %v348_v38 = vsel %vm296_vm7, %v2224_v37, 0.0  ;;  %v1933_v44 = vpop.eup %1932 }
 0x388   :  { %349 = vadd.xlane.f32.xlu2 %v348_v38  ;;  %v357_v50 = vsel %vm296_vm7, %v1933_v44, 0.0 }
 0x389   :  { %v314_v39 = vpop.xlane.xlu0 %313  ;;  %v308_v41 = vpop.xlane.xlu2 %307 }
 0x38a   :  { %v326_v42 = vsub.f32 %v293_v6, %v314_v39  ;;  %v324_v43 = vsub.f32 %v291_v10, %v308_v41 }
 0x38c   :  { %v1935_v45 = vpop.eup %1934  ;;  %v339_v47 = vmul.f32 1.442695, %v326_v42  ;;  %v335_v48 = vmul.f32 1.442695, %v324_v43 }
 0x38d   :  { %v351_v49 = vsel %vm296_vm7, %v1935_v45, 0.0 }
 0x38e   :  { %1936 = vpow2.f32 %v339_v47  ;;  %352 = vadd.xlane.f32.xlu1 %v351_v49 }
 0x38f   :  { %1938 = vpow2.f32 %v335_v48 }
 0x390   :  { %358 = vadd.xlane.f32.xlu2 %v357_v50 }
 0x391   :  { %v317_v51 = vpop.xlane.xlu0 %316  ;;  %v320_v52 = vpop.xlane.xlu2 %319 }
 0x392   :  { %v327_v53 = vsub.f32 %v294_v17, %v317_v51  ;;  %v328_v58 = vsub.f32 %v295_v18, %v320_v52 }
 0x394   :  { %v1937_v54 = vpop.eup %1936  ;;  %v341_v57 = vmul.f32 1.442695, %v327_v53  ;;  %v343_v62 = vmul.f32 1.442695, %v328_v58 }
 0x395   :  { %v1939_v59 = vpop.eup %1938  ;;  %v360_v60 = vsel %vm296_vm7, %v1937_v54, 0.0 }
 0x396   :  { %1940 = vpow2.f32 %v341_v57  ;;  %361 = vadd.xlane.f32.xlu1 %v360_v60  ;;  %v354_v61 = vsel %vm296_vm7, %v1939_v59, 0.0  ;;  %v493_v57 = vld [vmem:[%s2526_s5] sm:$0xf] }
 0x397   :  { %355 = vadd.xlane.f32.xlu0 %v354_v61  ;;  %1942 = vpow2.f32 %v343_v62  ;;  %v515_v58 = vsel %vm513_vm8, %v493_v57, 0  ;;  %v496_v61 = vld [vmem:[%s2526_s5 + $0xc] sm:$0xf] }
 0x398   :  { %v590_v62 = vsel %vm513_vm8, %v496_v61, 0 }
 0x39c   :  { %v1941_v63 = vpop.eup %1940 }
 0x39d   :  { %v363_v0 = vsel %vm296_vm7, %v1941_v63, 0.0  ;;  %v1943_v1 = vpop.eup %1942 }
 0x39e   :  { %364 = vadd.xlane.f32.xlu2 %v363_v0  ;;  %v366_v2 = vsel %vm296_vm7, %v1943_v1, 0.0 }
 0x3a6   :  { %367 = vadd.xlane.f32.xlu2 %v366_v2 }
 0x3ab   :  { %448 = vrot.lane.b32.xlu0 %v2176_v31, %s2063_s2 }
 0x3af   :  { %423 = vrot.lane.b32.xlu1 %v2170_v22, %s2063_s2 }
 0x3b3   :  { %473 = vrot.lane.b32.xlu0 %v2184_v40, %s2063_s2 }
 0x3be   :  { %398 = vrot.lane.b32.xlu2 %v2165_v12, %s2063_s2 }
 0x3f3   :  { %v347_v6 = vpop.xlane.xlu0 %346 }
 0x3fb   :  { %v350_v3 = vpop.xlane.xlu2 %349 }
 0x401   :  { %v353_v5 = vpop.xlane.xlu1 %352 }
 0x403   :  { %v359_v7 = vpop.xlane.xlu2 %358 }
 0x409   :  { %v362_v9 = vpop.xlane.xlu1 %361 }
 0x40a   :  { %1944 = vrcp.f32 %v362_v9  ;;  %v356_v10 = vpop.xlane.xlu0 %355 }
 0x40b   :  { %1946 = vrcp.f32 %v359_v7 }
 0x40c   :  { %1948 = vrcp.f32 %v350_v3 }
 0x40d   :  { %1950 = vrcp.f32 %v356_v10 }
 0x40e   :  { %1952 = vrcp.f32 %v347_v6 }
 0x40f   :  { %1954 = vrcp.f32 %v353_v5 }
 0x410   :  { %v1945_v31 = vpop.eup %1944 }
 0x411   :  { %v365_v22 = vpop.xlane.xlu2 %364  ;;  %v1947_v11 = vpop.eup %1946  ;;  %v382_v40 = vmul.f32 %v1945_v31, %v1937_v54 }
 0x412   :  { %v1949_v13 = vpop.eup %1948  ;;  %1956 = vrcp.f32 %v365_v22  ;;  %v381_v15 = vmul.f32 %v1947_v11, %v1933_v44 }
 0x413   :  { %v1951_v14 = vpop.eup %1950  ;;  %v378_v18 = vmul.f32 %v1949_v13, %v2224_v37  ;;  %v390_v19 = vpack.c.bf16 %v382_v40, %v382_v40 }
 0x414   :  { %v1953_v12 = vpop.eup %1952  ;;  %v380_v20 = vmul.f32 %v1951_v14, %v1939_v59  ;;  %v389_v24 = vpack.c.bf16 %v381_v15, %v381_v15  ;;  %v495_v59 = vld [vmem:[%s2526_s5 + $0x8] sm:$0xf] }
 0x415   :  { %v1955_v17 = vpop.eup %1954  ;;  %v377_v21 = vmul.f32 %v1953_v12, %v2220_v29  ;;  %v386_v27 = vpack.c.bf16 %v378_v18, %v378_v18  ;;  %v446_v28 = vunpack.c.l.b16 %v390_v19  ;;  %v565_v60 = vsel %vm513_vm8, %v495_v59, 0 }
 0x416   :  { %v379_v23 = vmul.f32 %v1955_v17, %v1935_v45  ;;  %v388_v30 = vpack.c.bf16 %v380_v20, %v380_v20  ;;  %v445_v34 = vunpack.c.l.b16 %v389_v24 }
 0x417   :  { %v385_v32 = vpack.c.bf16 %v377_v21, %v377_v21  ;;  %v396_v38 = vunpack.c.l.b16 %v386_v27 }
 0x418   :  { %v1957_v26 = vpop.eup %1956  ;;  %v387_v33 = vpack.c.bf16 %v379_v23, %v379_v23  ;;  %v421_v37 = vunpack.c.l.b16 %v388_v30  ;;  %v447_v39 = vpack.c.b16 %v446_v28, %v445_v34 }
 0x419   :  { %v368_v25 = vpop.xlane.xlu2 %367  ;;  %v383_v35 = vmul.f32 %v1957_v26, %v1941_v63  ;;  %v395_v42 = vunpack.c.l.b16 %v385_v32  ;;  %v494_v63 = vld [vmem:[%s2526_s5 + $0x4] sm:$0xf] }
 0x41a   :  { %1958 = vrcp.f32 %v368_v25  ;;  %v420_v29 = vunpack.c.l.b16 %v387_v33  ;;  %v540_v0 = vsel %vm513_vm8, %v494_v63, 0 }
 0x41b   :  { %v391_v43 = vpack.c.bf16 %v383_v35, %v383_v35  ;;  %v397_v49 = vpack.c.b16 %v396_v38, %v395_v42 }
 0x41c   :  { %v422_v50 = vpack.c.b16 %v421_v37, %v420_v29 }
 0x41d   :  { %v449_v36 = vpop.permute.xlu0 %448  ;;  %v470_v51 = vunpack.c.l.b16 %v391_v43 }
 0x41e   :  { %461 = vmatpush.bf16.msrb.mxu3 %v449_v36 }
 0x420   :  { %v1959_v41 = vpop.eup %1958 }
 0x421   :  { %v384_v44 = vmul.f32 %v1959_v41, %v1943_v1  ;;  %1695 = vmatmul.msk.bf16.vlgmr.msrb.gmra.mxu3 %vm296_vm7, %v447_v39  ;;  %v424_v45 = vpop.permute.xlu1 %423  ;;  %v399_v47 = vpop.permute.xlu2 %398  ;;  %v614_v39 = vperm.slane %v2158_v56, 4 }
 0x422   :  { %411 = vmatpush.bf16.msrb.mxu1 %v399_v47  ;;  %436 = vmatpush.bf16.msrb.mxu2 %v424_v45 }
 0x423   :  { %v392_v48 = vpack.c.bf16 %v384_v44, %v384_v44  ;;  %574 = vmatpush.bf16.msra.mxu3 %v565_v60 }
 0x425   :  { %v471_v52 = vunpack.c.l.b16 %v392_v48  ;;  %v474_v53 = vpop.permute.xlu0 %473  ;;  %1693 = vmatmul.msk.bf16.vlgmr.msrb.gmra.mxu1 %vm296_vm7, %v397_v49  ;;  %1694 = vmatmul.msk.bf16.vlgmr.msrb.gmra.mxu2 %vm296_vm7, %v422_v50 }
 0x426   :  { %486 = vmatpush.bf16.msra.mxu0 %v474_v53  ;;  %524 = vmatpush.bf16.msra.mxu1 %v515_v58 }
 0x427   :  { %v472_v54 = vpack.c.b16 %v471_v52, %v470_v51  ;;  %549 = vmatpush.bf16.msra.mxu2 %v540_v0  ;;  %v1846_v0 = vld [vmem:[%s2527_s6 + $0x8] sm:$0xff] }
 0x429   :  { %1696 = vmatmul.msk.bf16.vlgmr.msra.gmra.mxu0 %vm296_vm7, %v472_v54 }
 0x42a   :  { %599 = vmatpush.bf16.msrb.mxu0 %v590_v62  ;;  %703 = vmatpush.bf16.msrb.mxu1 %v1846_v0 }
 0x4a2   :  { %v413_v1 = vpop.f32.mrf.mxu1 }
 0x4a3   :  { %v497_v6 = vpack.c.bf16 %v413_v1, %v413_v1 }
 0x4a4   :  { %v463_v2 = vpop.f32.mrf.mxu3 }
 0x4a5   :  { %v501_v7 = vpack.c.bf16 %v463_v2, %v463_v2  ;;  %v507_v22 = vunpack.c.l.b16 %v497_v6  ;;  %v1845_v2 = vld [vmem:[%s2527_s6] sm:$0xff] }
 0x4a6   :  { %v488_v3 = vpop.f32.mrf.mxu0  ;;  %704 = vmatpush.bf16.msrb.mxu1 %v1845_v2 }
 0x4a7   :  { %v503_v11 = vpack.c.bf16 %v488_v3, %v488_v3  ;;  %v558_v14 = vunpack.c.l.b16 %v501_v7 }
 0x4a8   :  { %v438_v5 = vpop.f32.mrf.mxu2 }
 0x4a9   :  { %v499_v15 = vpack.c.bf16 %v438_v5, %v438_v5  ;;  %v583_v21 = vunpack.c.l.b16 %v503_v11 }
 0x4aa   :  { %v415_v9 = vpop.f32.mrf.mxu1 }
 0x4ab   :  { %v498_v10 = vpack.c.bf16 %v415_v9, %v415_v9  ;;  %v533_v26 = vunpack.c.l.b16 %v499_v15 }
 0x4ac   :  { %v465_v31 = vpop.f32.mrf.mxu3 }
 0x4ad   :  { %v508_v13 = vunpack.c.l.b16 %v498_v10  ;;  %v502_v40 = vpack.c.bf16 %v465_v31, %v465_v31 }
 0x4ae   :  { %v490_v12 = vpop.f32.mrf.mxu0 }
 0x4af   :  { %v509_v17 = vpack.c.b16 %v508_v13, %v507_v22  ;;  %v559_v18 = vunpack.c.l.b16 %v502_v40  ;;  %v504_v19 = vpack.c.bf16 %v490_v12, %v490_v12 }
 0x4b0   :  { %v440_v20 = vpop.f32.mrf.mxu2 }
 0x4b1   :  { %v560_v23 = vpack.c.b16 %v559_v18, %v558_v14  ;;  %v584_v24 = vunpack.c.l.b16 %v504_v19  ;;  %v500_v25 = vpack.c.bf16 %v440_v20, %v440_v20  ;;  %1697 = vmatmul.msk.bf16.vlgmr.msra.gmra.mxu1 %vm186_vm6, %v509_v17 }
 0x4b3   :  { %v585_v27 = vpack.c.b16 %v584_v24, %v583_v21  ;;  %v534_v28 = vunpack.c.l.b16 %v500_v25  ;;  %1699 = vmatmul.msk.bf16.vlgmr.msra.gmra.mxu3 %vm186_vm6, %v560_v23 }
 0x4b5   :  { %v535_v30 = vpack.c.b16 %v534_v28, %v533_v26  ;;  %1700 = vmatmul.msk.bf16.vlgmr.msrb.gmra.mxu0 %vm186_vm6, %v585_v27 }
 0x4b7   :  { %1698 = vmatmul.msk.bf16.vlgmr.msra.gmra.mxu2 %vm186_vm6, %v535_v30 }
 0x52e   :  { %v526_v32 = vpop.f32.mrf.mxu1 }
 0x532   :  { %v601_v36 = vpop.f32.mrf.mxu0 }
 0x536   :  { %v576_v33 = vpop.f32.mrf.mxu3  ;;  %v528_v42 = vpop.f32.mrf.mxu1 }
 0x53a   :  { %v551_v34 = vpop.f32.mrf.mxu2  ;;  %v603_v49 = vpop.f32.mrf.mxu0 }
 0x53b   :  { %v606_v35 = vadd.f32 %v551_v34, %v526_v32 }
 0x53d   :  { %v608_v38 = vadd.f32 %v606_v35, %v576_v33  ;;  %v667_v33 = vperm.slane %v2158_v56, 2 }
 0x53e   :  { %v578_v45 = vpop.f32.mrf.mxu3 }
 0x53f   :  { %v610_v37 = vadd.f32 %v608_v38, %v601_v36  ;;  %v670_v38 = vperm.slane %v2158_v56, 3 }
 0x541   :  { %v612_v41 = vadd.f32 %v610_v37, %v2133_v4 }
 0x542   :  { %v553_v29 = vpop.f32.mrf.mxu2 }
 0x543   :  { %v607_v43 = vadd.f32 %v553_v29, %v528_v42  ;;  %v2270_v44 = vadd.f32 %v614_v39, %v612_v41  ;;  %v1854_v29 = vld [vmem:[%s2529_s8 + $0x38] sm:$0xff] }
 0x544   :  { %794 = vmatpush.bf16.msrb.mxu2 %v1854_v29 }
 0x545   :  { %v609_v47 = vadd.f32 %v607_v43, %v578_v45  ;;  %v617_v48 = vsel %vm53_vm0, %v2270_v44, 0.0  ;;  %v1853_v43 = vld [vmem:[%s2529_s8 + $0x30] sm:$0xff]  ;;  %v1852_v45 = vld [vmem:[%s2529_s8 + $0x28] sm:$0xff] }
 0x546   :  { %618 = vadd.xlane.f32.xlu1 %v617_v48  ;;  %v1850_v48 = vld [vmem:[%s2529_s8 + $0x18] sm:$0xff] }
 0x547   :  { %v611_v50 = vadd.f32 %v609_v47, %v603_v49  ;;  %v1851_v47 = vld [vmem:[%s2529_s8 + $0x20] sm:$0xff]  ;;  %v1849_v49 = vld [vmem:[%s2529_s8 + $0x10] sm:$0xff] }
 0x548   :  { %795 = vmatpush.bf16.msrb.mxu2 %v1853_v43 }
 0x549   :  { %v613_v51 = vadd.f32 %v611_v50, %v2137_v8  ;;  %v1848_v50 = vld [vmem:[%s2529_s8 + $0x8] sm:$0xff] }
 0x54b   :  { %v2275_v52 = vadd.f32 %v614_v39, %v613_v51  ;;  %v1847_v51 = vld [vmem:[%s2529_s8] sm:$0xff] }
 0x54c   :  { %796 = vmatpush.bf16.msrb.mxu2 %v1852_v45 }
 0x54d   :  { %v620_v4 = vsel %vm53_vm0, %v2275_v52, 0.0 }
 0x54e   :  { %621 = vadd.xlane.f32.xlu0 %v620_v4  ;;  %v1916_v4 = vld [vmem:[%s2528_s7] ss:$0 sm:$0xff] }
 0x550   :  { %797 = vmatpush.bf16.msrb.mxu2 %v1851_v47 }
 0x554   :  { %798 = vmatpush.bf16.msrb.mxu2 %v1850_v48 }
 0x558   :  { %799 = vmatpush.bf16.msrb.mxu2 %v1849_v49 }
 0x55c   :  { %800 = vmatpush.bf16.msrb.mxu2 %v1848_v50 }
 0x560   :  { %801 = vmatpush.bf16.msrb.mxu2 %v1847_v51 }
 0x5b9   :  { %v619_v53 = vpop.xlane.xlu1 %618 }
 0x5ba   :  { %v623_v54 = vmul.f32 %v619_v53, %v2141_v16 }
 0x5bc   :  { %v625_v57 = vsub.f32 %v2270_v44, %v623_v54 }
 0x5be   :  { %v627_v58 = vmul.f32 %v625_v57, %v625_v57 }
 0x5c0   :  { %v629_v59 = vsel %vm53_vm0, %v627_v58, 0.0 }
 0x5c1   :  { %630 = vadd.xlane.f32.xlu2 %v629_v59  ;;  %v622_v60 = vpop.xlane.xlu0 %621 }
 0x5c2   :  { %v624_v61 = vmul.f32 %v622_v60, %v2141_v16 }
 0x5c4   :  { %v626_v8 = vsub.f32 %v2275_v52, %v624_v61 }
 0x5c6   :  { %v628_v62 = vmul.f32 %v626_v8, %v626_v8 }
 0x5c8   :  { %v632_v63 = vsel %vm53_vm0, %v628_v62, 0.0 }
 0x5c9   :  { %633 = vadd.xlane.f32.xlu1 %v632_v63 }
 0x634   :  { %v631_v1 = vpop.xlane.xlu2 %630 }
 0x635   :  { %v635_v3 = vmul.f32 0.032258064, %v631_v1 }
 0x637   :  { %1960 = vrsqrt.f32 %v635_v3  ;;  %vm644_vm9 = vcmp.eq.f32.partialorder %v635_v3, inf  ;;  %v647_v15 = vand.u32 2147483648, %v635_v3  ;;  %vm646_vm10 = vcmp.eq.f32.partialorder %v635_v3, 0.0 }
 0x63c   :  { %v634_v5 = vpop.xlane.xlu1 %633 }
 0x63d   :  { %v1961_v6 = vpop.eup %1960  ;;  %v636_v7 = vmul.f32 0.032258064, %v634_v5 }
 0x63e   :  { %v638_v9 = vmul.f32 %v1961_v6, %v635_v3 }
 0x63f   :  { %1962 = vrsqrt.f32 %v636_v7  ;;  %vm656_vm11 = vcmp.eq.f32.partialorder %v636_v7, inf  ;;  %v659_v25 = vand.u32 2147483648, %v636_v7  ;;  %vm658_vm12 = vcmp.eq.f32.partialorder %v636_v7, 0.0 }
 0x640   :  { %v639_v10 = vmul.f32 %v1961_v6, %v638_v9 }
 0x642   :  { %v640_v31 = vmul.f32 0.5, %v639_v10 }
 0x644   :  { %v641_v22 = vsub.f32 1.5, %v640_v31 }
 0x645   :  { %v1963_v11 = vpop.eup %1962 }
 0x646   :  { %v642_v13 = vmul.f32 %v1961_v6, %v641_v22  ;;  %v650_v40 = vmul.f32 %v1963_v11, %v636_v7 }
 0x648   :  { %v643_v14 = vmul.f32 %v642_v13, %v635_v3  ;;  %v651_v12 = vmul.f32 %v1963_v11, %v650_v40  ;;  %v810_v40 = vperm.slane %v2158_v56, 5 }
 0x64a   :  { %v645_v17 = vsel %vm644_vm9, %v635_v3, %v643_v14  ;;  %v652_v18 = vmul.f32 0.5, %v651_v12 }
 0x64b   :  { %v648_v19 = vsel %vm646_vm10, %v647_v15, %v645_v17 }
 0x64c   :  { %v653_v20 = vsub.f32 1.5, %v652_v18  ;;  %v661_v21 = vadd.f32 1e-05, %v648_v19 }
 0x64e   :  { %v654_v23 = vmul.f32 %v1963_v11, %v653_v20  ;;  %1964 = vrcp.f32 %v661_v21 }
 0x650   :  { %v655_v24 = vmul.f32 %v654_v23, %v636_v7 }
 0x652   :  { %v657_v26 = vsel %vm656_vm11, %v636_v7, %v655_v24 }
 0x653   :  { %v660_v27 = vsel %vm658_vm12, %v659_v25, %v657_v26 }
 0x654   :  { %v662_v28 = vadd.f32 1e-05, %v660_v27  ;;  %v1965_v30 = vpop.eup %1964 }
 0x655   :  { %v665_v32 = vmul.f32 %v1965_v30, %v625_v57 }
 0x656   :  { %1966 = vrcp.f32 %v662_v28 }
 0x657   :  { %v668_v36 = vmul.f32 %v667_v33, %v665_v32  ;;  %v1856_v32 = vld [vmem:[%s2525_s4 + $0x18] sm:$0xff] }
 0x658   :  { %898 = vmatpush.bf16.msrb.mxu3 %v1856_v32 }
 0x659   :  { %v671_v39 = vadd.f32 %v670_v38, %v668_v36 }
 0x65c   :  { %v1967_v34 = vpop.eup %1966 }
 0x65d   :  { %v666_v35 = vmul.f32 %v1967_v34, %v626_v8  ;;  %v1855_v34 = vld [vmem:[%s2525_s4 + $0x10] sm:$0xff] }
 0x65e   :  { %899 = vmatpush.bf16.msrb.mxu3 %v1855_v34 }
 0x65f   :  { %v669_v37 = vmul.f32 %v667_v33, %v666_v35 }
 0x661   :  { %v672_v41 = vadd.f32 %v670_v38, %v669_v37 }
 0x663   :  { %v677_v42 = vpack.c.bf16 %v672_v41, %v671_v39 }
 0x665   :  { %1709 = vmatmul.msk.bf16.vlgmr.msrb.gmra.mxu1 %vm53_vm0, %v677_v42 }
 0x6e2   :  { %v706_v53 = vpop.f32.mrf.mxu1 }
 0x6e3   :  { %v707_v54 = vadd.f32 %v1916_v4, %v706_v53 }
 0x6e5   :  { %v713_v57 = vmul.f32 %v707_v54, %v707_v54  ;;  %v711_v9 = vmul.f32 0.5, %v707_v54 }
 0x6e7   :  { %v715_v58 = vmul.f32 %v713_v57, %v707_v54 }
 0x6e9   :  { %v717_v59 = vmul.f32 0.044715, %v715_v58 }
 0x6ea   :  { %v708_v60 = vpop.f32.mrf.mxu1 }
 0x6eb   :  { %v719_v61 = vadd.f32 %v717_v59, %v707_v54  ;;  %v709_v8 = vadd.f32 %v1916_v4, %v708_v60 }
 0x6ed   :  { %v714_v62 = vmul.f32 %v709_v8, %v709_v8  ;;  %v721_v63 = vmul.f32 0.7978846, %v719_v61  ;;  %v712_v10 = vmul.f32 0.5, %v709_v8 }
 0x6ef   :  { %v716_v0 = vmul.f32 %v714_v62, %v709_v8  ;;  %1968 = vtanh.f32 %v721_v63 }
 0x6f1   :  { %v718_v1 = vmul.f32 0.044715, %v716_v0  ;;  %v2347_v0 = vld [vmem:[%s2524_s3 + $0x8] sm:$0x3f] }
 0x6f3   :  { %v720_v2 = vadd.f32 %v718_v1, %v709_v8 }
 0x6f5   :  { %v722_v3 = vmul.f32 0.7978846, %v720_v2  ;;  %v1969_v5 = vpop.eup %1968  ;;  %v865_v2 = vperm.slane %v2347_v0, 0 }
 0x6f6   :  { %v725_v6 = vadd.f32 1.0, %v1969_v5 }
 0x6f7   :  { %1970 = vtanh.f32 %v722_v3 }
 0x6f8   :  { %v727_v22 = vmul.f32 %v725_v6, %v711_v9 }
 0x6fd   :  { %v1971_v7 = vpop.eup %1970 }
 0x6fe   :  { %v726_v31 = vadd.f32 1.0, %v1971_v7  ;;  %v868_v7 = vperm.slane %v2347_v0, 1 }
 0x700   :  { %v728_v11 = vmul.f32 %v726_v31, %v712_v10 }
 0x702   :  { %v745_v13 = vpack.c.bf16 %v728_v11, %v727_v22 }
 0x704   :  { %802 = vmatmul.bf16.vlgmr.msrb.gmra.mxu2 %v745_v13 }
 0x787   :  { %v803_v14 = vpop.f32.mrf.mxu2 }
 0x788   :  { %v808_v12 = vadd.f32 %v803_v14, %v2270_v44 }
 0x78a   :  { %v2323_v15 = vadd.f32 %v810_v40, %v808_v12 }
 0x78c   :  { %v815_v17 = vsel %vm53_vm0, %v2323_v15, 0.0 }
 0x78d   :  { %816 = vadd.xlane.f32.xlu0 %v815_v17 }
 0x78f   :  { %v805_v18 = vpop.f32.mrf.mxu2 }
 0x790   :  { %v809_v19 = vadd.f32 %v805_v18, %v2275_v52 }
 0x792   :  { %v2328_v20 = vadd.f32 %v810_v40, %v809_v19 }
 0x794   :  { %v818_v21 = vsel %vm53_vm0, %v2328_v20, 0.0 }
 0x795   :  { %819 = vadd.xlane.f32.xlu1 %v818_v21 }
 0x800   :  { %v817_v23 = vpop.xlane.xlu0 %816 }
 0x801   :  { %v821_v56 = vmul.f32 %v817_v23, %v2141_v16 }
 0x803   :  { %v823_v44 = vsub.f32 %v2323_v15, %v821_v56 }
 0x805   :  { %v825_v24 = vmul.f32 %v823_v44, %v823_v44 }
 0x807   :  { %v827_v25 = vsel %vm53_vm0, %v825_v24, 0.0 }
 0x808   :  { %828 = vadd.xlane.f32.xlu0 %v827_v25  ;;  %v820_v26 = vpop.xlane.xlu1 %819 }
 0x809   :  { %v822_v27 = vmul.f32 %v820_v26, %v2141_v16 }
 0x80b   :  { %v824_v52 = vsub.f32 %v2328_v20, %v822_v27 }
 0x80d   :  { %v826_v28 = vmul.f32 %v824_v52, %v824_v52 }
 0x80f   :  { %v830_v30 = vsel %vm53_vm0, %v826_v28, 0.0 }
 0x810   :  { %831 = vadd.xlane.f32.xlu1 %v830_v30 }
 0x87b   :  { %v829_v33 = vpop.xlane.xlu0 %828 }
 0x87c   :  { %v833_v35 = vmul.f32 0.032258064, %v829_v33 }
 0x87e   :  { %1972 = vrsqrt.f32 %v833_v35  ;;  %vm842_vm13 = vcmp.eq.f32.partialorder %v833_v35, inf  ;;  %v845_v50 = vand.u32 2147483648, %v833_v35  ;;  %vm844_vm14 = vcmp.eq.f32.partialorder %v833_v35, 0.0 }
 0x883   :  { %v832_v36 = vpop.xlane.xlu1 %831 }
 0x884   :  { %v1973_v38 = vpop.eup %1972  ;;  %v834_v37 = vmul.f32 0.032258064, %v832_v36 }
 0x885   :  { %v836_v39 = vmul.f32 %v1973_v38, %v833_v35 }
 0x886   :  { %1974 = vrsqrt.f32 %v834_v37  ;;  %vm854_vm15 = vcmp.eq.f32.partialorder %v834_v37, inf  ;;  %v857_v60 = vand.u32 2147483648, %v834_v37  ;;  %vm856_vm1 = vcmp.eq.f32.partialorder %v834_v37, 0.0 }
 0x887   :  { %v837_v41 = vmul.f32 %v1973_v38, %v836_v39 }
 0x889   :  { %v838_v42 = vmul.f32 0.5, %v837_v41 }
 0x88b   :  { %v839_v29 = vsub.f32 1.5, %v838_v42 }
 0x88c   :  { %v1975_v43 = vpop.eup %1974 }
 0x88d   :  { %v840_v45 = vmul.f32 %v1973_v38, %v839_v29  ;;  %v848_v47 = vmul.f32 %v1975_v43, %v834_v37 }
 0x88f   :  { %v841_v48 = vmul.f32 %v840_v45, %v833_v35  ;;  %v849_v49 = vmul.f32 %v1975_v43, %v848_v47 }
 0x891   :  { %v843_v51 = vsel %vm842_vm13, %v833_v35, %v841_v48  ;;  %v850_v4 = vmul.f32 0.5, %v849_v49 }
 0x892   :  { %v846_v53 = vsel %vm844_vm14, %v845_v50, %v843_v51 }
 0x893   :  { %v851_v54 = vsub.f32 1.5, %v850_v4  ;;  %v859_v57 = vadd.f32 1e-05, %v846_v53 }
 0x895   :  { %v852_v58 = vmul.f32 %v1975_v43, %v851_v54  ;;  %1976 = vrcp.f32 %v859_v57 }
 0x897   :  { %v853_v59 = vmul.f32 %v852_v58, %v834_v37 }
 0x899   :  { %v855_v61 = vsel %vm854_vm15, %v834_v37, %v853_v59 }
 0x89a   :  { %v858_v8 = vsel %vm856_vm1, %v857_v60, %v855_v61 }
 0x89b   :  { %v860_v62 = vadd.f32 1e-05, %v858_v8  ;;  %v1977_v63 = vpop.eup %1976 }
 0x89c   :  { %v863_v1 = vmul.f32 %v1977_v63, %v823_v44 }
 0x89d   :  { %1978 = vrcp.f32 %v860_v62 }
 0x89e   :  { %v866_v6 = vmul.f32 %v865_v2, %v863_v1 }
 0x8a0   :  { %v869_v10 = vadd.f32 %v868_v7, %v866_v6 }
 0x8a3   :  { %v1979_v3 = vpop.eup %1978 }
 0x8a4   :  { %v864_v5 = vmul.f32 %v1979_v3, %v824_v52 }
 0x8a6   :  { %v867_v9 = vmul.f32 %v865_v2, %v864_v5 }
 0x8a8   :  { %v870_v31 = vadd.f32 %v868_v7, %v867_v9 }
 0x8aa   :  { %v876_v22 = vpack.c.bf16 %v870_v31, %v869_v10 }
 0x8ac   :  { %1755 = vmatmul.msk.bf16.vlgmr.msrb.gmra.mxu3 %vm53_vm0, %v876_v22 }
 0x92f   :  { %v901_v11 = vpop.f32.mrf.mxu3 }
 0x930   :  { %v926_v13 = vpack.c.bf16 %v901_v11, %v901_v11 }
 0x932   :  { %v936_v17 = vunpack.c.l.b16 %v926_v13 }
 0x937   :  { %v903_v40 = vpop.f32.mrf.mxu3 }
 0x938   :  { %v927_v14 = vpack.c.bf16 %v903_v40, %v903_v40  ;;  %v1911_v12 = vpack.i.bf16 %v903_v40, %v901_v11 }
 0x93a   :  { %v937_v18 = vunpack.c.l.b16 %v927_v14  ;;  %1912 = vrot.lane.b32.xlu1 %v1911_v12, %s2059_s25  ;;  %1907 = vrot.lane.b32.xlu0 %v1911_v12, %s2060_s26 }
 0x93b   :  { %1902 = vrot.lane.b32.xlu2 %v1911_v12, %s2061_s27 }
 0x93c   :  { %v2355_v19 = vpack.c.b16 %v937_v18, %v936_v17 }
 0x93e   :  { %v945_v21 = vsel %vm186_vm6, %v2355_v19, 0 }
 0x93f   :  { %954 = vmatpush.bf16.xpose.msra.mxu0 %v945_v21 }
 0x943   :  { %939 = vrot.lane.b32.xlu2 %v2355_v19, %s2062_s28 }
 0x995   :  { %v1903_v23 = vpop.permute.xlu2 %1902 }
 0x996   :  { %v1905_v56 = vunpack.i.h.bf16 %v1903_v23  ;;  %v1904_v44 = vunpack.i.l.bf16 %v1903_v23 }
 0x998   :  { %v931_v24 = vpack.c.bf16 %v1905_v56, %v1905_v56  ;;  %v930_v25 = vpack.c.bf16 %v1904_v44, %v1904_v44 }
 0x99a   :  { %v991_v26 = vunpack.c.l.b16 %v931_v24  ;;  %v990_v27 = vunpack.c.l.b16 %v930_v25 }
 0x99c   :  { %v2361_v52 = vpack.c.b16 %v991_v26, %v990_v27 }
 0x99d   :  { %v940_v28 = vpop.permute.xlu2 %939 }
 0x99e   :  { %993 = vrot.lane.b32.xlu0 %v2361_v52, %s2062_s28  ;;  %1756 = vmatmul.msk.bf16.vlgmr.msra.gmra.mxu0 %vm186_vm6, %v940_v28  ;;  %v999_v30 = vsel %vm186_vm6, %v2361_v52, 0 }
 0x99f   :  { %1008 = vmatpush.bf16.xpose.msra.mxu3 %v999_v30 }
 0x9ac   :  { %v1913_v32 = vpop.permute.xlu1 %1912  ;;  %v1908_v33 = vpop.permute.xlu0 %1907 }
 0x9ad   :  { %v1915_v34 = vunpack.i.h.bf16 %v1913_v32  ;;  %v1914_v35 = vunpack.i.l.bf16 %v1913_v32  ;;  %v1910_v36 = vunpack.i.h.bf16 %v1908_v33  ;;  %v1909_v38 = vunpack.i.l.bf16 %v1908_v33 }
 0x9af   :  { %v933_v37 = vpack.c.bf16 %v1915_v34, %v1915_v34  ;;  %v932_v39 = vpack.c.bf16 %v1914_v35, %v1914_v35  ;;  %v929_v41 = vpack.c.bf16 %v1910_v36, %v1910_v36  ;;  %v928_v42 = vpack.c.bf16 %v1909_v38, %v1909_v38 }
 0x9b1   :  { %v1018_v29 = vunpack.c.l.b16 %v933_v37  ;;  %v1017_v43 = vunpack.c.l.b16 %v932_v39  ;;  %v964_v45 = vunpack.c.l.b16 %v929_v41  ;;  %v963_v47 = vunpack.c.l.b16 %v928_v42 }
 0x9b3   :  { %v965_v48 = vpack.c.b16 %v964_v45, %v963_v47  ;;  %v2368_v49 = vpack.c.b16 %v1018_v29, %v1017_v43 }
 0x9b5   :  { %966 = vrot.lane.b32.xlu1 %v965_v48, %s2062_s28  ;;  %1020 = vrot.lane.b32.xlu0 %v2368_v49, %s2062_s28  ;;  %v972_v50 = vsel %vm186_vm6, %v965_v48, 0  ;;  %v1026_v51 = vsel %vm186_vm6, %v2368_v49, 0 }
 0x9b6   :  { %981 = vmatpush.bf16.xpose.msra.mxu1 %v972_v50  ;;  %1035 = vmatpush.bf16.xpose.msrb.mxu0 %v1026_v51 }
 0xa10   :  { %v994_v4 = vpop.permute.xlu0 %993 }
 0xa11   :  { %1758 = vmatmul.msk.bf16.vlgmr.msra.gmra.mxu3 %vm186_vm6, %v994_v4 }
 0xa1b   :  { %v956_v53 = vpop.f32.mrf.mxu0 }
 0xa1c   :  { %v957_v54 = vadd.f32 %v956_v53, %v2197_v46 }
 0xa1e   :  { %v1042_v57 = vmul.f32 0.35355338, %v957_v54 }
 0xa20   :  { %v1050_v58 = vsel %vm296_vm7, %v1042_v57, -inf }
 0xa21   :  { %1051 = vmax.xlane.f32.xlu1 %v1050_v58 }
 0xa23   :  { %v958_v59 = vpop.f32.mrf.mxu0 }
 0xa24   :  { %v959_v60 = vadd.f32 %v958_v59, %v2206_v55 }
 0xa26   :  { %v1043_v61 = vmul.f32 0.35355338, %v959_v60 }
 0xa27   :  { %v967_v8 = vpop.permute.xlu1 %966  ;;  %v1021_v62 = vpop.permute.xlu0 %1020 }
 0xa28   :  { %1757 = vmatmul.msk.bf16.vlgmr.msra.gmra.mxu1 %vm186_vm6, %v967_v8  ;;  %1759 = vmatmul.msk.bf16.vlgmr.msrb.gmra.mxu0 %vm186_vm6, %v1021_v62  ;;  %v1053_v63 = vsel %vm296_vm7, %v1043_v61, -inf }
 0xa29   :  { %1054 = vmax.xlane.f32.xlu0 %v1053_v63 }
 0xa94   :  { %v1010_v1 = vpop.f32.mrf.mxu3  ;;  %v1052_v13 = vpop.xlane.xlu1 %1051 }
 0xa95   :  { %v1011_v2 = vadd.f32 %v1010_v1, %v2197_v46  ;;  %v1074_v21 = vsub.f32 %v1042_v57, %v1052_v13 }
 0xa97   :  { %v1046_v3 = vmul.f32 0.35355338, %v1011_v2  ;;  %v1082_v27 = vmul.f32 1.442695, %v1074_v21 }
 0xa99   :  { %v1062_v5 = vsel %vm296_vm7, %v1046_v3, -inf  ;;  %1980 = vpow2.f32 %v1082_v27 }
 0xa9a   :  { %1063 = vmax.xlane.f32.xlu0 %v1062_v5 }
 0xa9c   :  { %v1012_v10 = vpop.f32.mrf.mxu3  ;;  %v1055_v12 = vpop.xlane.xlu0 %1054 }
 0xa9d   :  { %v1013_v22 = vadd.f32 %v1012_v10, %v2206_v55  ;;  %v1075_v56 = vsub.f32 %v1043_v61, %v1055_v12 }
 0xa9f   :  { %v1047_v14 = vmul.f32 0.35355338, %v1013_v22  ;;  %v1084_v28 = vmul.f32 1.442695, %v1075_v56 }
 0xaa1   :  { %v1065_v25 = vsel %vm296_vm7, %v1047_v14, -inf  ;;  %1982 = vpow2.f32 %v1084_v28 }
 0xaa5   :  { %v983_v6 = vpop.f32.mrf.mxu1  ;;  %v1037_v7 = vpop.f32.mrf.mxu0 }
 0xaa6   :  { %v984_v9 = vadd.f32 %v983_v6, %v2197_v46  ;;  %v1038_v44 = vadd.f32 %v1037_v7, %v2197_v46  ;;  %v2396_v46 = vpop.eup %1980 }
 0xaa7   :  { %v1098_v36 = vsel %vm296_vm7, %v2396_v46, 0.0 }
 0xaa8   :  { %v1044_v31 = vmul.f32 0.35355338, %v984_v9  ;;  %v1048_v30 = vmul.f32 0.35355338, %v1038_v44 }
 0xaaa   :  { %v1056_v11 = vsel %vm296_vm7, %v1044_v31, -inf  ;;  %v1068_v33 = vsel %vm296_vm7, %v1048_v30, -inf }
 0xaab   :  { %1057 = vmax.xlane.f32.xlu2 %v1056_v11 }
 0xaad   :  { %v985_v40 = vpop.f32.mrf.mxu1  ;;  %v1039_v18 = vpop.f32.mrf.mxu0 }
 0xaae   :  { %v986_v17 = vadd.f32 %v985_v40, %v2206_v55  ;;  %1176 = vrot.lane.b32.xlu0 %v965_v48, %s2063_s2  ;;  %v1040_v24 = vadd.f32 %v1039_v18, %v2206_v55  ;;  %v2398_v55 = vpop.eup %1982 }
 0xaaf   :  { %v1101_v35 = vsel %vm296_vm7, %v2398_v55, 0.0 }
 0xab0   :  { %v1045_v23 = vmul.f32 0.35355338, %v986_v17  ;;  %v1049_v32 = vmul.f32 0.35355338, %v1040_v24 }
 0xab2   :  { %v1059_v26 = vsel %vm296_vm7, %v1045_v23, -inf  ;;  %v1071_v34 = vsel %vm296_vm7, %v1049_v32, -inf }
 0xab3   :  { %1066 = vmax.xlane.f32.xlu2 %v1065_v25  ;;  %1060 = vmax.xlane.f32.xlu1 %v1059_v26 }
 0xabb   :  { %1069 = vmax.xlane.f32.xlu2 %v1068_v33  ;;  %1072 = vmax.xlane.f32.xlu1 %v1071_v34 }
 0xac3   :  { %1102 = vadd.xlane.f32.xlu1 %v1101_v35  ;;  %1099 = vadd.xlane.f32.xlu2 %v1098_v36 }
 0xb0d   :  { %v1064_v38 = vpop.xlane.xlu0 %1063 }
 0xb0e   :  { %v1078_v37 = vsub.f32 %v1046_v3, %v1064_v38 }
 0xb10   :  { %v1090_v39 = vmul.f32 1.442695, %v1078_v37 }
 0xb12   :  { %1984 = vpow2.f32 %v1090_v39 }
 0xb18   :  { %v1985_v41 = vpop.eup %1984 }
 0xb19   :  { %v1110_v42 = vsel %vm296_vm7, %v1985_v41, 0.0 }
 0xb1a   :  { %1111 = vadd.xlane.f32.xlu1 %v1110_v42 }
 0xb1e   :  { %v1058_v29 = vpop.xlane.xlu2 %1057 }
 0xb1f   :  { %v1076_v43 = vsub.f32 %v1044_v31, %v1058_v29 }
 0xb20   :  { %v1177_v45 = vpop.permute.xlu0 %1176 }
 0xb21   :  { %v1086_v47 = vmul.f32 1.442695, %v1076_v43  ;;  %1189 = vmatpush.bf16.msra.mxu2 %v1177_v45 }
 0xb23   :  { %1986 = vpow2.f32 %v1086_v47 }
 0xb26   :  { %v1067_v48 = vpop.xlane.xlu2 %1066  ;;  %v1061_v50 = vpop.xlane.xlu1 %1060 }
 0xb27   :  { %v1079_v51 = vsub.f32 %v1047_v14, %v1067_v48  ;;  %v1077_v4 = vsub.f32 %v1045_v23, %v1061_v50 }
 0xb29   :  { %v1987_v53 = vpop.eup %1986  ;;  %v1092_v54 = vmul.f32 1.442695, %v1079_v51  ;;  %v1088_v57 = vmul.f32 1.442695, %v1077_v4 }
 0xb2a   :  { %v1104_v58 = vsel %vm296_vm7, %v1987_v53, 0.0 }
 0xb2b   :  { %1988 = vpow2.f32 %v1092_v54  ;;  %1105 = vadd.xlane.f32.xlu0 %v1104_v58 }
 0xb2c   :  { %1990 = vpow2.f32 %v1088_v57 }
 0xb2e   :  { %v1070_v59 = vpop.xlane.xlu2 %1069  ;;  %v1073_v60 = vpop.xlane.xlu1 %1072 }
 0xb2f   :  { %v1080_v61 = vsub.f32 %v1048_v30, %v1070_v59  ;;  %v1081_v63 = vsub.f32 %v1049_v32, %v1073_v60  ;;  %v1765_v60 = vld [vmem:[%s2526_s5 + $0x14] sm:$0xf] }
 0xb31   :  { %v1989_v8 = vpop.eup %1988  ;;  %v1094_v62 = vmul.f32 1.442695, %v1080_v61  ;;  %v1096_v5 = vmul.f32 1.442695, %v1081_v63  ;;  %v1766_v61 = vld [vmem:[%s2526_s5 + $0x18] sm:$0xf] }
 0xb32   :  { %v1991_v1 = vpop.eup %1990  ;;  %v1113_v2 = vsel %vm296_vm7, %v1989_v8, 0.0  ;;  %v1764_v63 = vld [vmem:[%s2526_s5 + $0x10] sm:$0xf] }
 0xb33   :  { %1992 = vpow2.f32 %v1094_v62  ;;  %1114 = vadd.xlane.f32.xlu0 %v1113_v2  ;;  %v1107_v3 = vsel %vm296_vm7, %v1991_v1, 0.0  ;;  %v1318_v62 = vsel %vm513_vm8, %v1766_v61, 0 }
 0xb34   :  { %1108 = vadd.xlane.f32.xlu2 %v1107_v3  ;;  %1994 = vpow2.f32 %v1096_v5 }
 0xb36   :  { %v1103_v31 = vpop.xlane.xlu1 %1102  ;;  %v1100_v13 = vpop.xlane.xlu2 %1099 }
 0xb39   :  { %v2408_v6 = vpop.eup %1992 }
 0xb3a   :  { %v1116_v7 = vsel %vm296_vm7, %v2408_v6, 0.0  ;;  %v1995_v9 = vpop.eup %1994 }
 0xb3b   :  { %1117 = vadd.xlane.f32.xlu1 %v1116_v7  ;;  %v1119_v10 = vsel %vm296_vm7, %v1995_v9, 0.0 }
 0xb43   :  { %1120 = vadd.xlane.f32.xlu1 %v1119_v10 }
 0xb47   :  { %1151 = vrot.lane.b32.xlu0 %v2355_v19, %s2063_s2 }
 0xb4c   :  { %1201 = vrot.lane.b32.xlu2 %v2361_v52, %s2063_s2 }
 0xb5c   :  { %1226 = vrot.lane.b32.xlu1 %v2368_v49, %s2063_s2 }
 0xb8d   :  { %v1112_v22 = vpop.xlane.xlu1 %1111 }
 0xb8e   :  { %1996 = vrcp.f32 %v1112_v22 }
 0xb94   :  { %v1997_v14 = vpop.eup %1996 }
 0xb95   :  { %v1134_v19 = vmul.f32 %v1997_v14, %v1985_v41 }
 0xb97   :  { %v1142_v56 = vpack.c.bf16 %v1134_v19, %v1134_v19 }
 0xb99   :  { %v1198_v34 = vunpack.c.l.b16 %v1142_v56 }
 0xb9e   :  { %v1106_v11 = vpop.xlane.xlu0 %1105 }
 0xb9f   :  { %1998 = vrcp.f32 %v1106_v11 }
 0xba0   :  { %2000 = vrcp.f32 %v1100_v13 }
 0xba1   :  { %2002 = vrcp.f32 %v1103_v31 }
 0xba5   :  { %v1999_v17 = vpop.eup %1998 }
 0xba6   :  { %v1115_v40 = vpop.xlane.xlu0 %1114  ;;  %v2001_v18 = vpop.eup %2000  ;;  %v1132_v52 = vmul.f32 %v1999_v17, %v1987_v53 }
 0xba7   :  { %2004 = vrcp.f32 %v1115_v40  ;;  %v1109_v12 = vpop.xlane.xlu2 %1108  ;;  %v2003_v21 = vpop.eup %2002  ;;  %v1130_v25 = vmul.f32 %v2001_v18, %v2396_v46 }
 0xba8   :  { %2006 = vrcp.f32 %v1109_v12  ;;  %v1131_v26 = vmul.f32 %v2003_v21, %v2398_v55  ;;  %v1140_v27 = vpack.c.bf16 %v1132_v52, %v1132_v52 }
 0xba9   :  { %v1138_v36 = vpack.c.bf16 %v1130_v25, %v1130_v25 }
 0xbaa   :  { %v1139_v38 = vpack.c.bf16 %v1131_v26, %v1131_v26  ;;  %v1173_v37 = vunpack.c.l.b16 %v1140_v27 }
 0xbab   :  { %v1148_v29 = vunpack.c.l.b16 %v1138_v36 }
 0xbac   :  { %v1149_v46 = vunpack.c.l.b16 %v1139_v38 }
 0xbad   :  { %v2005_v23 = vpop.eup %2004 }
 0xbae   :  { %v2007_v49 = vpop.eup %2006  ;;  %v1135_v44 = vmul.f32 %v2005_v23, %v1989_v8  ;;  %v1118_v24 = vpop.xlane.xlu1 %1117  ;;  %v1150_v45 = vpack.c.b16 %v1149_v46, %v1148_v29  ;;  %v1293_v8 = vsel %vm513_vm8, %v1765_v60, 0 }
 0xbaf   :  { %v1133_v28 = vmul.f32 %v2007_v49, %v1991_v1  ;;  %v1202_v30 = vpop.permute.xlu2 %1201  ;;  %1302 = vmatpush.bf16.msrb.mxu2 %v1293_v8  ;;  %v1268_v1 = vsel %vm513_vm8, %v1764_v63, 0 }
 0xbb0   :  { %v1143_v32 = vpack.c.bf16 %v1135_v44, %v1135_v44  ;;  %1214 = vmatpush.bf16.msrb.mxu3 %v1202_v30 }
 0xbb1   :  { %v1141_v33 = vpack.c.bf16 %v1133_v28, %v1133_v28 }
 0xbb2   :  { %v1199_v35 = vunpack.c.l.b16 %v1143_v32 }
 0xbb3   :  { %v1174_v39 = vunpack.c.l.b16 %v1141_v33 }
 0xbb4   :  { %v1200_v41 = vpack.c.b16 %v1199_v35, %v1198_v34  ;;  %1327 = vmatpush.bf16.msra.mxu3 %v1318_v62 }
 0xbb5   :  { %v1175_v42 = vpack.c.b16 %v1174_v39, %v1173_v37 }
 0xbb6   :  { %1762 = vmatmul.msk.bf16.vlgmr.msrb.gmra.mxu3 %vm296_vm7, %v1200_v41  ;;  %v1121_v55 = vpop.xlane.xlu1 %1120 }
 0xbb7   :  { %1761 = vmatmul.msk.bf16.vlgmr.msra.gmra.mxu2 %vm296_vm7, %v1175_v42  ;;  %2008 = vrcp.f32 %v1121_v55  ;;  %v1367_v42 = vperm.slane %v2347_v0, 4 }
 0xbb8   :  { %2010 = vrcp.f32 %v1118_v24 }
 0xbb9   :  { %v1152_v43 = vpop.permute.xlu0 %1151 }
 0xbba   :  { %1164 = vmatpush.bf16.msrb.mxu1 %v1152_v43 }
 0xbbd   :  { %1760 = vmatmul.msk.bf16.vlgmr.msrb.gmra.mxu1 %vm296_vm7, %v1150_v45  ;;  %v2009_v47 = vpop.eup %2008 }
 0xbbe   :  { %v2011_v48 = vpop.eup %2010  ;;  %v1137_v50 = vmul.f32 %v2009_v47, %v1995_v9  ;;  %1277 = vmatpush.bf16.msra.mxu1 %v1268_v1  ;;  %v1858_v1 = vld [vmem:[%s2527_s6 + $0x18] sm:$0xff] }
 0xbbf   :  { %v1136_v51 = vmul.f32 %v2011_v48, %v2408_v6  ;;  %v1767_v6 = vld [vmem:[%s2526_s5 + $0x1c] sm:$0xf]  ;;  %s1666_s5 = sshll.u32 %s2064_s16, 4  ;;  %s1667_s5 = int_to_ptr.vmem [resolvable:$true] %s1666_s5 }
 0xbc0   :  { %v1145_v4 = vpack.c.bf16 %v1137_v50, %v1137_v50  ;;  %v1343_v7 = vsel %vm513_vm8, %v1767_v6, 0 }
 0xbc1   :  { %v1144_v53 = vpack.c.bf16 %v1136_v51, %v1136_v51 }
 0xbc2   :  { %v1224_v54 = vunpack.c.l.b16 %v1145_v4  ;;  %1458 = vmatpush.bf16.msrb.mxu1 %v1858_v1 }
 0xbc3   :  { %v1223_v57 = vunpack.c.l.b16 %v1144_v53 }
 0xbc5   :  { %v1225_v59 = vpack.c.b16 %v1224_v54, %v1223_v57 }
 0xbce   :  { %v1227_v58 = vpop.permute.xlu1 %1226 }
 0xbcf   :  { %1239 = vmatpush.bf16.msra.mxu0 %v1227_v58 }
 0xbd2   :  { %1763 = vmatmul.msk.bf16.vlgmr.msra.gmra.mxu0 %vm296_vm7, %v1225_v59 }
 0xbd3   :  { %1352 = vmatpush.bf16.msrb.mxu0 %v1343_v7 }
 0xc39   :  { %v1216_v2 = vpop.f32.mrf.mxu3 }
 0xc3a   :  { %v1191_v3 = vpop.f32.mrf.mxu2  ;;  %v1166_v5 = vpop.f32.mrf.mxu1  ;;  %v1255_v9 = vpack.c.bf16 %v1216_v2, %v1216_v2 }
 0xc3b   :  { %v1253_v10 = vpack.c.bf16 %v1191_v3, %v1191_v3  ;;  %v1251_v31 = vpack.c.bf16 %v1166_v5, %v1166_v5  ;;  %v1857_v3 = vld [vmem:[%s2527_s6 + $0x10] sm:$0xff]  ;;  %s2066_s6 = smov 8  }
 0xc3c   :  { %v1311_v17 = vunpack.c.l.b16 %v1255_v9  ;;  %1459 = vmatpush.bf16.msrb.mxu1 %v1857_v3 }
 0xc3d   :  { %v1286_v18 = vunpack.c.l.b16 %v1253_v10  ;;  %v1261_v52 = vunpack.c.l.b16 %v1251_v31 }
 0xc41   :  { %v1218_v22 = vpop.f32.mrf.mxu3 }
 0xc42   :  { %v1193_v11 = vpop.f32.mrf.mxu2  ;;  %v1256_v13 = vpack.c.bf16 %v1218_v22, %v1218_v22  ;;  %v1168_v40 = vpop.f32.mrf.mxu1 }
 0xc43   :  { %v1254_v14 = vpack.c.bf16 %v1193_v11, %v1193_v11  ;;  %v1252_v12 = vpack.c.bf16 %v1168_v40, %v1168_v40 }
 0xc44   :  { %v1312_v19 = vunpack.c.l.b16 %v1256_v13 }
 0xc45   :  { %v1287_v21 = vunpack.c.l.b16 %v1254_v14  ;;  %v1262_v23 = vunpack.c.l.b16 %v1252_v12 }
 0xc46   :  { %v1313_v49 = vpack.c.b16 %v1312_v19, %v1311_v17 }
 0xc47   :  { %v1288_v56 = vpack.c.b16 %v1287_v21, %v1286_v18  ;;  %v1263_v44 = vpack.c.b16 %v1262_v23, %v1261_v52 }
 0xc48   :  { %1770 = vmatmul.msk.bf16.vlgmr.msra.gmra.mxu3 %vm186_vm6, %v1313_v49 }
 0xc49   :  { %1769 = vmatmul.msk.bf16.vlgmr.msrb.gmra.mxu2 %vm186_vm6, %v1288_v56  ;;  %1768 = vmatmul.msk.bf16.vlgmr.msra.gmra.mxu1 %vm186_vm6, %v1263_v44 }
 0xc4f   :  { %v1241_v24 = vpop.f32.mrf.mxu0 }
 0xc50   :  { %v1257_v25 = vpack.c.bf16 %v1241_v24, %v1241_v24 }
 0xc52   :  { %v1336_v28 = vunpack.c.l.b16 %v1257_v25 }
 0xc57   :  { %v1243_v26 = vpop.f32.mrf.mxu0 }
 0xc58   :  { %v1258_v27 = vpack.c.bf16 %v1243_v26, %v1243_v26 }
 0xc5a   :  { %v1337_v30 = vunpack.c.l.b16 %v1258_v27 }
 0xc5c   :  { %v1338_v32 = vpack.c.b16 %v1337_v30, %v1336_v28 }
 0xc5e   :  { %1771 = vmatmul.msk.bf16.vlgmr.msrb.gmra.mxu0 %vm186_vm6, %v1338_v32  ;;  %v1420_v32 = vperm.slane %v2347_v0, 2 }
 0xcc6   :  { %v1279_v34 = vpop.f32.mrf.mxu1 }
 0xccb   :  { %v1329_v36 = vpop.f32.mrf.mxu3 }
 0xccc   :  { %v1304_v33 = vpop.f32.mrf.mxu2 }
 0xccd   :  { %v1359_v35 = vadd.f32 %v1304_v33, %v1279_v34 }
 0xcce   :  { %v1281_v29 = vpop.f32.mrf.mxu1 }
 0xccf   :  { %v1361_v38 = vadd.f32 %v1359_v35, %v1329_v36  ;;  %v1423_v36 = vperm.slane %v2347_v0, 3 }
 0xcd3   :  { %v1331_v45 = vpop.f32.mrf.mxu3 }
 0xcd4   :  { %v1306_v37 = vpop.f32.mrf.mxu2 }
 0xcd5   :  { %v1360_v46 = vadd.f32 %v1306_v37, %v1281_v29  ;;  %v1865_v29 = vld [vmem:[%s2529_s8 + $0x70] sm:$0xff] }
 0xcd7   :  { %v1362_v47 = vadd.f32 %v1360_v46, %v1331_v45  ;;  %v1864_v46 = vld [vmem:[%s2529_s8 + $0x68] sm:$0xff]  ;;  %v1862_v45 = vld [vmem:[%s2529_s8 + $0x58] sm:$0xff] }
 0xcdb   :  { %v1354_v39 = vpop.f32.mrf.mxu0 }
 0xcdc   :  { %v1363_v41 = vadd.f32 %v1361_v38, %v1354_v39 }
 0xcde   :  { %v1365_v55 = vadd.f32 %v1363_v41, %v2323_v15 }
 0xce0   :  { %v2448_v43 = vadd.f32 %v1367_v42, %v1365_v55  ;;  %v1863_v55 = vld [vmem:[%s2529_s8 + $0x60] sm:$0xff] }
 0xce2   :  { %v1370_v48 = vsel %vm53_vm0, %v2448_v43, 0.0 }
 0xce3   :  { %1371 = vadd.xlane.f32.xlu2 %v1370_v48  ;;  %v1356_v50 = vpop.f32.mrf.mxu0  ;;  %v1860_v48 = vld [vmem:[%s2529_s8 + $0x48] sm:$0xff] }
 0xce4   :  { %v1364_v51 = vadd.f32 %v1362_v47, %v1356_v50  ;;  %v1861_v47 = vld [vmem:[%s2529_s8 + $0x50] sm:$0xff]  ;;  %v1859_v50 = vld [vmem:[%s2529_s8 + $0x40] sm:$0xff] }
 0xce6   :  { %v1366_v4 = vadd.f32 %v1364_v51, %v2328_v20  ;;  %v1917_v51 = vld [vmem:[%s2528_s7 + $0x1] ss:$0 sm:$0xff] }
 0xce8   :  { %v2453_v53 = vadd.f32 %v1367_v42, %v1366_v4  ;;  %v1866_v42 = vld [vmem:[%s2529_s8 + $0x78] sm:$0xff] }
 0xce9   :  { %1550 = vmatpush.bf16.msra.mxu2 %v1866_v42 }
 0xcea   :  { %v1373_v54 = vsel %vm53_vm0, %v2453_v53, 0.0 }
 0xceb   :  { %1374 = vadd.xlane.f32.xlu0 %v1373_v54 }
 0xced   :  { %1551 = vmatpush.bf16.msra.mxu2 %v1865_v29 }
 0xcf1   :  { %1552 = vmatpush.bf16.msra.mxu2 %v1864_v46 }
 0xcf5   :  { %1553 = vmatpush.bf16.msra.mxu2 %v1863_v55 }
 0xcf9   :  { %1554 = vmatpush.bf16.msra.mxu2 %v1862_v45 }
 0xcfd   :  { %1555 = vmatpush.bf16.msra.mxu2 %v1861_v47 }
 0xd01   :  { %1556 = vmatpush.bf16.msra.mxu2 %v1860_v48 }
 0xd05   :  { %1557 = vmatpush.bf16.msra.mxu2 %v1859_v50 }
 0xd56   :  { %v1372_v57 = vpop.xlane.xlu2 %1371 }
 0xd57   :  { %v1376_v15 = vmul.f32 %v1372_v57, %v2141_v16 }
 0xd59   :  { %v1378_v58 = vsub.f32 %v2448_v43, %v1376_v15 }
 0xd5b   :  { %v1380_v59 = vmul.f32 %v1378_v58, %v1378_v58 }
 0xd5d   :  { %v1382_v60 = vsel %vm53_vm0, %v1380_v59, 0.0 }
 0xd5e   :  { %1383 = vadd.xlane.f32.xlu1 %v1382_v60  ;;  %v1375_v61 = vpop.xlane.xlu0 %1374 }
 0xd5f   :  { %v1377_v8 = vmul.f32 %v1375_v61, %v2141_v16 }
 0xd61   :  { %v1379_v20 = vsub.f32 %v2453_v53, %v1377_v8 }
 0xd63   :  { %v1381_v62 = vmul.f32 %v1379_v20, %v1379_v20 }
 0xd65   :  { %v1385_v63 = vsel %vm53_vm0, %v1381_v62, 0.0 }
 0xd66   :  { %1386 = vadd.xlane.f32.xlu2 %v1385_v63 }
 0xdd1   :  { %v1384_v2 = vpop.xlane.xlu1 %1383 }
 0xdd2   :  { %v1388_v5 = vmul.f32 0.032258064, %v1384_v2 }
 0xdd4   :  { %2012 = vrsqrt.f32 %v1388_v5  ;;  %vm1397_vm2 = vcmp.eq.f32.partialorder %v1388_v5, inf  ;;  %v1400_v19 = vand.u32 2147483648, %v1388_v5  ;;  %vm1399_vm3 = vcmp.eq.f32.partialorder %v1388_v5, 0.0 }
 0xdd9   :  { %v1387_v6 = vpop.xlane.xlu2 %1386 }
 0xdda   :  { %v2013_v7 = vpop.eup %2012  ;;  %v1389_v9 = vmul.f32 0.032258064, %v1387_v6 }
 0xddb   :  { %v1391_v10 = vmul.f32 %v2013_v7, %v1388_v5 }
 0xddc   :  { %2014 = vrsqrt.f32 %v1389_v9  ;;  %vm1409_vm4 = vcmp.eq.f32.partialorder %v1389_v9, inf  ;;  %v1412_v24 = vand.u32 2147483648, %v1389_v9  ;;  %vm1411_vm5 = vcmp.eq.f32.partialorder %v1389_v9, 0.0 }
 0xddd   :  { %v1392_v31 = vmul.f32 %v2013_v7, %v1391_v10 }
 0xddf   :  { %v1393_v22 = vmul.f32 0.5, %v1392_v31 }
 0xde1   :  { %v1394_v11 = vsub.f32 1.5, %v1393_v22 }
 0xde2   :  { %v2015_v13 = vpop.eup %2014 }
 0xde3   :  { %v1395_v40 = vmul.f32 %v2013_v7, %v1394_v11  ;;  %v1403_v14 = vmul.f32 %v2015_v13, %v1389_v9 }
 0xde5   :  { %v1396_v12 = vmul.f32 %v1395_v40, %v1388_v5  ;;  %v1404_v17 = vmul.f32 %v2015_v13, %v1403_v14 }
 0xde7   :  { %v1398_v18 = vsel %vm1397_vm2, %v1388_v5, %v1396_v12  ;;  %v1405_v52 = vmul.f32 0.5, %v1404_v17 }
 0xde8   :  { %v1401_v21 = vsel %vm1399_vm3, %v1400_v19, %v1398_v18 }
 0xde9   :  { %v1406_v23 = vsub.f32 1.5, %v1405_v52  ;;  %v1414_v49 = vadd.f32 1e-05, %v1401_v21 }
 0xdeb   :  { %v1407_v56 = vmul.f32 %v2015_v13, %v1406_v23  ;;  %2016 = vrcp.f32 %v1414_v49  ;;  %v1566_v13 = vperm.slane %v2347_v0, 5 }
 0xded   :  { %v1408_v44 = vmul.f32 %v1407_v56, %v1389_v9 }
 0xdef   :  { %v1410_v25 = vsel %vm1409_vm4, %v1389_v9, %v1408_v44 }
 0xdf0   :  { %v1413_v26 = vsel %vm1411_vm5, %v1412_v24, %v1410_v25 }
 0xdf1   :  { %v1415_v27 = vadd.f32 1e-05, %v1413_v26  ;;  %v2017_v28 = vpop.eup %2016 }
 0xdf2   :  { %v1418_v30 = vmul.f32 %v2017_v28, %v1378_v58 }
 0xdf3   :  { %2018 = vrcp.f32 %v1415_v27 }
 0xdf4   :  { %v1421_v35 = vmul.f32 %v1420_v32, %v1418_v30  ;;  %v1867_v30 = vld [vmem:[%s2531_s10] sm:$0xff] }
 0xdf6   :  { %v1424_v37 = vadd.f32 %v1423_v36, %v1421_v35 }
 0xdf9   :  { %v2019_v33 = vpop.eup %2018 }
 0xdfa   :  { %v1419_v34 = vmul.f32 %v2019_v33, %v1379_v20 }
 0xdfc   :  { %v1422_v38 = vmul.f32 %v1420_v32, %v1419_v34 }
 0xdfe   :  { %v1425_v39 = vadd.f32 %v1423_v36, %v1422_v38 }
 0xe00   :  { %v1431_v41 = vpack.c.bf16 %v1425_v39, %v1424_v37 }
 0xe02   :  { %1785 = vmatmul.msk.bf16.vlgmr.msrb.gmra.mxu1 %vm53_vm0, %v1431_v41 }
 0xe7f   :  { %v1461_v4 = vpop.f32.mrf.mxu1 }
 0xe80   :  { %v1462_v54 = vadd.f32 %v1917_v51, %v1461_v4 }
 0xe82   :  { %v1468_v57 = vmul.f32 %v1462_v54, %v1462_v54  ;;  %v1466_v7 = vmul.f32 0.5, %v1462_v54 }
 0xe84   :  { %v1470_v15 = vmul.f32 %v1468_v57, %v1462_v54 }
 0xe86   :  { %v1472_v58 = vmul.f32 0.044715, %v1470_v15 }
 0xe87   :  { %v1463_v59 = vpop.f32.mrf.mxu1 }
 0xe88   :  { %v1474_v60 = vadd.f32 %v1472_v58, %v1462_v54  ;;  %v1464_v61 = vadd.f32 %v1917_v51, %v1463_v59 }
 0xe8a   :  { %v1469_v8 = vmul.f32 %v1464_v61, %v1464_v61  ;;  %v1476_v20 = vmul.f32 0.7978846, %v1474_v60  ;;  %v1467_v9 = vmul.f32 0.5, %v1464_v61 }
 0xe8c   :  { %v1471_v62 = vmul.f32 %v1469_v8, %v1464_v61  ;;  %2020 = vtanh.f32 %v1476_v20 }
 0xe8e   :  { %v1473_v63 = vmul.f32 0.044715, %v1471_v62 }
 0xe90   :  { %v1475_v1 = vadd.f32 %v1473_v63, %v1464_v61  ;;  %v1569_v61 = vld [vmem:[%s2530_s9] sm:$0x3]  ;;  %s1668_s9 = sshll.u32 %s2532_s11, 4  ;;  %s1669_s9 = int_to_ptr.hbm [resolvable:$true] %s1668_s9 }
 0xe91   :  { %v1620_v20 = vperm.slane %v1569_v61, 0 }
 0xe92   :  { %v1477_v2 = vmul.f32 0.7978846, %v1475_v1  ;;  %v2021_v3 = vpop.eup %2020 }
 0xe93   :  { %v1480_v5 = vadd.f32 1.0, %v2021_v3 }
 0xe94   :  { %2022 = vtanh.f32 %v1477_v2  ;;  %v1623_v2 = vperm.slane %v1569_v61, 1 }
 0xe95   :  { %v1482_v31 = vmul.f32 %v1480_v5, %v1466_v7 }
 0xe9a   :  { %v2023_v6 = vpop.eup %2022 }
 0xe9b   :  { %v1481_v10 = vadd.f32 1.0, %v2023_v6 }
 0xe9d   :  { %v1483_v22 = vmul.f32 %v1481_v10, %v1467_v9 }
 0xe9f   :  { %v1501_v11 = vpack.c.bf16 %v1483_v22, %v1482_v31 }
 0xea1   :  { %1558 = vmatmul.bf16.vlgmr.msra.gmra.mxu2 %v1501_v11 }
 0xf24   :  { %v1559_v40 = vpop.f32.mrf.mxu2 }
 0xf25   :  { %v1564_v14 = vadd.f32 %v1559_v40, %v2448_v43 }
 0xf27   :  { %v1567_v12 = vadd.f32 %v1566_v13, %v1564_v14 }
 0xf29   :  { %v1570_v17 = vsel %vm53_vm0, %v1567_v12, 0.0 }
 0xf2a   :  { %1571 = vadd.xlane.f32.xlu0 %v1570_v17 }
 0xf2c   :  { %v1561_v19 = vpop.f32.mrf.mxu2 }
 0xf2d   :  { %v1565_v18 = vadd.f32 %v1561_v19, %v2453_v53  ;;  %v1868_v53 = vld [vmem:[%s2531_s10 + $0x8] sm:$0xff] }
 0xf2e   :  { %1652 = vmatpush.bf16.msrb.mxu3 %v1868_v53 }
 0xf2f   :  { %v1568_v52 = vadd.f32 %v1566_v13, %v1565_v18 }
 0xf31   :  { %v1573_v21 = vsel %vm53_vm0, %v1568_v52, 0.0 }
 0xf32   :  { %1574 = vadd.xlane.f32.xlu2 %v1573_v21  ;;  %1653 = vmatpush.bf16.msrb.mxu3 %v1867_v30 }
 0xf9d   :  { %v1572_v23 = vpop.xlane.xlu0 %1571 }
 0xf9e   :  { %v1576_v49 = vmul.f32 %v1572_v23, %v2141_v16 }
 0xfa0   :  { %v1578_v56 = vsub.f32 %v1567_v12, %v1576_v49 }
 0xfa2   :  { %v1580_v44 = vmul.f32 %v1578_v56, %v1578_v56 }
 0xfa4   :  { %v1582_v0 = vsel %vm53_vm0, %v1580_v44, 0.0 }
 0xfa5   :  { %1583 = vadd.xlane.f32.xlu0 %v1582_v0  ;;  %v1575_v43 = vpop.xlane.xlu2 %1574 }
 0xfa6   :  { %v1577_v24 = vmul.f32 %v1575_v43, %v2141_v16 }
 0xfa8   :  { %v1579_v25 = vsub.f32 %v1568_v52, %v1577_v24 }
 0xfaa   :  { %v1581_v26 = vmul.f32 %v1579_v25, %v1579_v25 }
 0xfac   :  { %v1585_v27 = vsel %vm53_vm0, %v1581_v26, 0.0 }
 0xfad   :  { %1586 = vadd.xlane.f32.xlu2 %v1585_v27 }
0x1018   :  { %v1584_v28 = vpop.xlane.xlu0 %1583 }
0x1019   :  { %v1588_v32 = vmul.f32 0.032258064, %v1584_v28 }
0x101b   :  { %2024 = vrsqrt.f32 %v1588_v32  ;;  %vm1597_vm6 = vcmp.eq.f32.partialorder %v1588_v32, inf  ;;  %v1600_v55 = vand.u32 2147483648, %v1588_v32  ;;  %vm1599_vm7 = vcmp.eq.f32.partialorder %v1588_v32, 0.0 }
0x1020   :  { %v1587_v33 = vpop.xlane.xlu2 %1586 }
0x1021   :  { %v2025_v16 = vpop.eup %2024  ;;  %v1589_v34 = vmul.f32 0.032258064, %v1587_v33 }
0x1022   :  { %v1591_v35 = vmul.f32 %v2025_v16, %v1588_v32 }
0x1023   :  { %2026 = vrsqrt.f32 %v1589_v34  ;;  %vm1609_vm8 = vcmp.eq.f32.partialorder %v1589_v34, inf  ;;  %v1612_v57 = vand.u32 2147483648, %v1589_v34  ;;  %vm1611_vm9 = vcmp.eq.f32.partialorder %v1589_v34, 0.0 }
0x1024   :  { %v1592_v36 = vmul.f32 %v2025_v16, %v1591_v35 }
0x1026   :  { %v1593_v38 = vmul.f32 0.5, %v1592_v36 }
0x1028   :  { %v1594_v37 = vsub.f32 1.5, %v1593_v38 }
0x1029   :  { %v2027_v39 = vpop.eup %2026 }
0x102a   :  { %v1595_v41 = vmul.f32 %v2025_v16, %v1594_v37  ;;  %v1603_v42 = vmul.f32 %v2027_v39, %v1589_v34 }
0x102c   :  { %v1596_v29 = vmul.f32 %v1595_v41, %v1588_v32  ;;  %v1604_v46 = vmul.f32 %v2027_v39, %v1603_v42 }
0x102e   :  { %v1598_v45 = vsel %vm1597_vm6, %v1588_v32, %v1596_v29  ;;  %v1605_v47 = vmul.f32 0.5, %v1604_v46 }
0x102f   :  { %v1601_v48 = vsel %vm1599_vm7, %v1600_v55, %v1598_v45 }
0x1030   :  { %v1606_v50 = vsub.f32 1.5, %v1605_v47  ;;  %v1614_v51 = vadd.f32 1e-05, %v1601_v48 }
0x1032   :  { %v1607_v4 = vmul.f32 %v2027_v39, %v1606_v50  ;;  %2028 = vrcp.f32 %v1614_v51 }
0x1034   :  { %v1608_v54 = vmul.f32 %v1607_v4, %v1589_v34 }
0x1036   :  { %v1610_v15 = vsel %vm1609_vm8, %v1589_v34, %v1608_v54 }
0x1037   :  { %v1613_v58 = vsel %vm1611_vm9, %v1612_v57, %v1610_v15 }
0x1038   :  { %v1615_v59 = vadd.f32 1e-05, %v1613_v58  ;;  %v2029_v60 = vpop.eup %2028 }
0x1039   :  { %v1618_v8 = vmul.f32 %v2029_v60, %v1578_v56 }
0x103a   :  { %2030 = vrcp.f32 %v1615_v59 }
0x103b   :  { %v1621_v1 = vmul.f32 %v1620_v20, %v1618_v8 }
0x103d   :  { %v1624_v5 = vadd.f32 %v1623_v2, %v1621_v1 }
0x1040   :  { %v2031_v62 = vpop.eup %2030 }
0x1041   :  { %v1619_v63 = vmul.f32 %v2031_v62, %v1579_v25 }
0x1043   :  { %v1622_v3 = vmul.f32 %v1620_v20, %v1619_v63 }
0x1045   :  { %v1625_v6 = vadd.f32 %v1623_v2, %v1622_v3 }
0x1047   :  { %v1630_v7 = vpack.c.bf16 %v1625_v6, %v1624_v5 }
0x1049   :  { %1842 = vmatmul.msk.bf16.vlgmr.msrb.gmra.mxu3 %vm53_vm0, %v1630_v7 }
0x10cc   :  { %v1655_v9 = vpop.f32.mrf.mxu3 }
0x10cd   :  { %1660 = vst [vmem:[#allocation2] sm:$0xff] %v1655_v9 }
0x10d4   :  { %v1657_v10 = vpop.f32.mrf.mxu3 }
0x10d5   :  { %1661 = vst [vmem:[#allocation2 + $0x8] sm:$0xff] %v1657_v10 }
0x10d6   :  { %1674 = dma.vmem_to_hbm [thread:$0]  %s1667_s5, 256, %s1669_s9, [#allocation3], %s2065_s19, %s2065_s19, %s2066_s6  }
0x10d7   :  { %2056 = dma.done.wait [#allocation3], 256  }
0x10d8   :  { %2057 = vsyncadd [#allocation3], 4294967040 }
0x10d9   :  { %1679 = vsyncpa [#allocation3], 1 }

</bundles_post_ra>
